<compile_context>
chip_gen: v7x
topology: tpu7x:2x2x1
jax: 0.10.0
libtpu: 0.0.40
codegen_flags: <defaults>
</compile_context>

<pallas_src>
import math
from functools import partial

import jax
import jax.numpy as jnp
from jax import lax
from jax.experimental import pallas as pl
from jax.experimental.pallas import tpu as pltpu


# ---------------------------------------------------------------------------
# Model config (small, consistent with ModelArgs)
# ---------------------------------------------------------------------------
DIM = 64
N_LAYERS = 2
N_HEADS = 4
HEAD_DIM = DIM // N_HEADS          # 16
HIDDEN_DIM = 128
VOCAB = 256
MAX_SEQ_LEN = 16
NORM_EPS = 1e-5
BATCH = 2
SEQ = 8


# ---------------------------------------------------------------------------
# Fused whole-model Pallas kernel (single invocation, everything in VMEM)
# ---------------------------------------------------------------------------
def _rmsnorm(x, w, eps):
    # x: (R, D) f32, w: (1, D) f32
    ms = jnp.mean(x * x, axis=-1, keepdims=True)
    return (x * lax.rsqrt(ms + eps)) * w


def fused_transformer_kernel(
    x_ref, cos_ref, sin_ref, mask_ref,
    attn_nw_ref, wqkvr_ref, wo_ref,
    ffn_nw_ref, w13_ref, w2_ref,
    final_nw_ref, emb_t_ref,
    logits_ref,
    *, n_layers, n_heads, head_dim, hidden_dim, seq_len, batch, eps,
):
    f32 = jnp.float32
    D = x_ref.shape[-1]
    S = seq_len

    # Constants loaded once, reused across the static layer loop.
    cos = cos_ref[...]            # (B*S, D)
    sin = sin_ref[...]            # (B*S, D)
    mask = mask_ref[...]          # (B*S, B*S) additive causal + batch-block mask
    scale = 1.0 / math.sqrt(head_dim)

    h = x_ref[...]                # (B*S, D) residual stream, VMEM-resident values

    for l in range(n_layers):
        # ---- attention sub-layer (pre-norm) ----
        xn = _rmsnorm(h, attn_nw_ref[l], eps)
        # One fused projection: columns are [wq | wq_rot | wk | wk_rot | wv].
        proj = jnp.dot(xn, wqkvr_ref[l], preferred_element_type=f32)   # (B*S, 5D)

        q = proj[:, 0 * D:1 * D] * cos + proj[:, 1 * D:2 * D] * sin    # RoPE
        k = proj[:, 2 * D:3 * D] * cos + proj[:, 3 * D:4 * D] * sin
        v = proj[:, 4 * D:5 * D]

        head_outs = []
        for hh in range(n_heads):
            sl = slice(hh * head_dim, (hh + 1) * head_dim)
            qh, kh, vh = q[:, sl], k[:, sl], v[:, sl]                  # (B*S, hd)
            s = jnp.einsum('qd,kd->qk', qh, kh,
                           preferred_element_type=f32) * scale + mask
            m = jnp.max(s, axis=-1, keepdims=True)
            p = jnp.exp(s - m)
            p = p / jnp.sum(p, axis=-1, keepdims=True)
            head_outs.append(jnp.dot(p, vh, preferred_element_type=f32))
        attn = jnp.concatenate(head_outs, axis=-1)                     # (B*S, D)
        h = h + jnp.dot(attn, wo_ref[l], preferred_element_type=f32)

        # ---- feed-forward sub-layer (pre-norm, SwiGLU) ----
        hn = _rmsnorm(h, ffn_nw_ref[l], eps)
        a13 = jnp.dot(hn, w13_ref[l], preferred_element_type=f32)      # (B*S, 2H)
        a1 = a13[:, :hidden_dim]
        a3 = a13[:, hidden_dim:]
        h = h + jnp.dot((a1 * jax.nn.sigmoid(a1)) * a3, w2_ref[l],
                        preferred_element_type=f32)

    # ---- fused final head: RMSNorm + tied-weight logits for the last token
    #      of each batch row-block; lane-dense (B, VOCAB) store. ----
    last = jnp.concatenate(
        [h[bi * S + S - 1: bi * S + S, :] for bi in range(batch)], axis=0)  # (B, D)
    ln = _rmsnorm(last, final_nw_ref[...], eps)
    logits_ref[...] = jnp.dot(ln, emb_t_ref[...], preferred_element_type=f32)


# ---------------------------------------------------------------------------
# Wrapper: single pallas_call for the whole model, under jit
# ---------------------------------------------------------------------------
@jax.jit
def transformer_forward_pallas(tokens, fused):
    B, S = tokens.shape
    D, V, H, L = DIM, VOCAB, HIDDEN_DIM, N_LAYERS
    BS = B * S
    # Token-embedding gather (data-dependent) stays as one XLA op in the wrapper.
    emb = fused['embed'][tokens].reshape(BS, D)

    logits = pl.pallas_call(
        partial(fused_transformer_kernel, n_layers=L, n_heads=N_HEADS,
                head_dim=HEAD_DIM, hidden_dim=H, seq_len=S, batch=B,
                eps=NORM_EPS),
        out_shape=jax.ShapeDtypeStruct((B, V), jnp.float32),
        grid=(1,),
        in_specs=[
            pl.BlockSpec((BS, D), lambda i: (0, 0)),           # embeddings (B*S, D)
            pl.BlockSpec((BS, D), lambda i: (0, 0)),           # cos (tiled to B*S)
            pl.BlockSpec((BS, D), lambda i: (0, 0)),           # sin (tiled to B*S)
            pl.BlockSpec((BS, BS), lambda i: (0, 0)),          # causal + batch mask
            pl.BlockSpec((L, 1, D), lambda i: (0, 0, 0)),      # attn norm w
            pl.BlockSpec((L, D, 5 * D), lambda i: (0, 0, 0)),  # wq|wq_rot|wk|wk_rot|wv
            pl.BlockSpec((L, D, D), lambda i: (0, 0, 0)),      # wo
            pl.BlockSpec((L, 1, D), lambda i: (0, 0, 0)),      # ffn norm w
            pl.BlockSpec((L, D, 2 * H), lambda i: (0, 0, 0)),  # w1|w3
            pl.BlockSpec((L, H, D), lambda i: (0, 0, 0)),      # w2
            pl.BlockSpec((1, D), lambda i: (0, 0)),            # final norm w
            pl.BlockSpec((D, V), lambda i: (0, 0)),            # embed^T (tied head)
        ],
        out_specs=pl.BlockSpec((B, V), lambda i: (0, 0)),
        compiler_params=pltpu.CompilerParams(
            dimension_semantics=("arbitrary",)),
    )(emb, fused['cos_bs'], fused['sin_bs'], fused['mask'],
      fused['attn_norm'], fused['wqkvr'], fused['wo'],
      fused['ffn_norm'], fused['w13'], fused['w2'],
      fused['final_norm'], fused['embed_t'])
    return logits.reshape(B, 1, V)


# ---------------------------------------------------------------------------
# Parameters / RoPE precompute / one-time weight fusion (plain JAX glue)
# ---------------------------------------------------------------------------
def precompute_freqs_cis(dim, end, theta=10000.0):
    freqs = 1.0 / theta ** (jnp.arange(0, dim, 2)[: dim // 2].astype(jnp.float32) / dim)
    t = jnp.arange(end, dtype=jnp.float32)
    f = jnp.outer(t, freqs)
    return jnp.cos(f), jnp.sin(f)


def rot_swizzle(w):
    # columns: out[:, 2k] = -w[:, 2k+1] ; out[:, 2k+1] = w[:, 2k]
    din, dout = w.shape
    wm = w.reshape(din, dout // 2, 2)
    return jnp.stack([-wm[..., 1], wm[..., 0]], axis=-1).reshape(din, dout)


def init_params(key):
    std = 0.02
    keys = jax.random.split(key, 1 + 7 * N_LAYERS)
    params = {'embed': jax.random.normal(keys[0], (VOCAB, DIM), jnp.float32) * std,
              'final_norm': jnp.ones((1, DIM), jnp.float32),
              'layers': []}
    ki = 1
    for _ in range(N_LAYERS):
        wq = jax.random.normal(keys[ki + 0], (DIM, DIM), jnp.float32) * std
        wk = jax.random.normal(keys[ki + 1], (DIM, DIM), jnp.float32) * std
        wv = jax.random.normal(keys[ki + 2], (DIM, DIM), jnp.float32) * std
        wo = jax.random.normal(keys[ki + 3], (DIM, DIM), jnp.float32) * std
        w1 = jax.random.normal(keys[ki + 4], (DIM, HIDDEN_DIM), jnp.float32) * std
        w3 = jax.random.normal(keys[ki + 5], (DIM, HIDDEN_DIM), jnp.float32) * std
        w2 = jax.random.normal(keys[ki + 6], (HIDDEN_DIM, DIM), jnp.float32) * std
        ki += 7
        params['layers'].append({
            'attn_norm': jnp.ones((1, DIM), jnp.float32),
            'ffn_norm': jnp.ones((1, DIM), jnp.float32),
            'wq': wq, 'wk': wk, 'wv': wv, 'wo': wo,
            'w1': w1, 'w3': w3, 'w2': w2,
        })
    return params


def prepare_fused_params(params, freqs_cos, freqs_sin, seq_len, batch):
    """One-time hoisted prep: RoPE tables (tiled to B*S), causal+batch mask,
    embed.T and the stacked / fused weights."""
    fc = freqs_cos[:seq_len]                       # (S, hd/2)
    fs = freqs_sin[:seq_len]
    cos_full = jnp.tile(jnp.repeat(fc, 2, axis=-1), (1, N_HEADS))   # (S, D)
    sin_full = jnp.tile(jnp.repeat(fs, 2, axis=-1), (1, N_HEADS))
    cos_bs = jnp.tile(cos_full, (batch, 1))                         # (B*S, D)
    sin_bs = jnp.tile(sin_full, (batch, 1))

    pos = jnp.arange(batch * seq_len)
    bidx = pos // seq_len
    sidx = pos % seq_len
    allowed = (bidx[:, None] == bidx[None, :]) & (sidx[None, :] <= sidx[:, None])
    mask = jnp.where(allowed, 0.0, -1e30).astype(jnp.float32)       # (B*S, B*S)

    layers = params['layers']
    wqkvr = jnp.stack([
        jnp.concatenate([L['wq'], rot_swizzle(L['wq']),
                         L['wk'], rot_swizzle(L['wk']), L['wv']], axis=1)
        for L in layers])                                           # (L, D, 5D)
    w13 = jnp.stack([jnp.concatenate([L['w1'], L['w3']], axis=1)
                     for L in layers])                              # (L, D, 2H)
    return {
        'embed': params['embed'],
        'embed_t': params['embed'].T,                               # (D, V)
        'final_norm': params['final_norm'],                         # (1, D)
        'cos_bs': cos_bs, 'sin_bs': sin_bs, 'mask': mask,
        'attn_norm': jnp.stack([L['attn_norm'] for L in layers]),   # (L, 1, D)
        'ffn_norm': jnp.stack([L['ffn_norm'] for L in layers]),     # (L, 1, D)
        'wqkvr': wqkvr,
        'wo': jnp.stack([L['wo'] for L in layers]),                 # (L, D, D)
        'w13': w13,                                                 # (L, D, 2H)
        'w2': jnp.stack([L['w2'] for L in layers]),                 # (L, H, D)
    }


# ---------------------------------------------------------------------------
# Pure-JAX reference (mirrors the PyTorch forward) for validation
# ---------------------------------------------------------------------------
def _rmsnorm_ref(x, w):
    ms = jnp.mean(x * x, axis=-1, keepdims=True)
    return x * lax.rsqrt(ms + NORM_EPS) * w.reshape(-1)


def transformer_forward_ref(tokens, params, freqs_cos, freqs_sin):
    B, S = tokens.shape
    h = params['embed'][tokens]
    fc = freqs_cos[:S][None, :, None, :]
    fs = freqs_sin[:S][None, :, None, :]
    mask = jnp.where(jnp.tril(jnp.ones((S, S), bool)), 0.0, -jnp.inf)
    for layer in params['layers']:
        xn = _rmsnorm_ref(h, layer['attn_norm'])
        xq = (xn @ layer['wq']).reshape(B, S, N_HEADS, HEAD_DIM)
        xk = (xn @ layer['wk']).reshape(B, S, N_HEADS, HEAD_DIM)
        xv = (xn @ layer['wv']).reshape(B, S, N_HEADS, HEAD_DIM)
        qr, qi = xq.reshape(B, S, N_HEADS, HEAD_DIM // 2, 2)[..., 0], \
                 xq.reshape(B, S, N_HEADS, HEAD_DIM // 2, 2)[..., 1]
        kr, ki = xk.reshape(B, S, N_HEADS, HEAD_DIM // 2, 2)[..., 0], \
                 xk.reshape(B, S, N_HEADS, HEAD_DIM // 2, 2)[..., 1]
        xq = jnp.stack([qr * fc - qi * fs, qr * fs + qi * fc], -1).reshape(B, S, N_HEADS, HEAD_DIM)
        xk = jnp.stack([kr * fc - ki * fs, kr * fs + ki * fc], -1).reshape(B, S, N_HEADS, HEAD_DIM)
        q, k, v = (t.transpose(0, 2, 1, 3) for t in (xq, xk, xv))   # (B,H,S,hd)
        scores = jnp.einsum('bhqd,bhkd->bhqk', q, k) / math.sqrt(HEAD_DIM) + mask
        p = jax.nn.softmax(scores, axis=-1)
        o = jnp.einsum('bhqk,bhkd->bhqd', p, v).transpose(0, 2, 1, 3).reshape(B, S, DIM)
        h = h + o @ layer['wo']
        hn = _rmsnorm_ref(h, layer['ffn_norm'])
        h = h + (jax.nn.silu(hn @ layer['w1']) * (hn @ layer['w3'])) @ layer['w2']
    h = _rmsnorm_ref(h, params['final_norm'])
    return (h[:, -1:, :] @ params['embed'].T)


# ---------------------------------------------------------------------------
if __name__ == "__main__":
    key = jax.random.PRNGKey(0)
    pkey, tkey = jax.random.split(key)
    params = init_params(pkey)
    freqs_cos, freqs_sin = precompute_freqs_cis(HEAD_DIM, MAX_SEQ_LEN)
    fused = prepare_fused_params(params, freqs_cos, freqs_sin, SEQ, BATCH)

    tokens = jax.random.randint(tkey, (BATCH, SEQ), 0, VOCAB, dtype=jnp.int32)

    logits = jax.block_until_ready(transformer_forward_pallas(tokens, fused))
    assert logits.shape == (BATCH, 1, VOCAB)

    ref = transformer_forward_ref(tokens, params, freqs_cos, freqs_sin)
    assert jnp.allclose(logits, ref, rtol=1e-4, atol=1e-4), \
        f"max abs diff {jnp.max(jnp.abs(logits - ref))}"

    print("KERNEL_OK")
</pallas_src>

<mosaic_0001>
module attributes {stable_mosaic.version = 11 : i64} {
  func.func @fused_transformer_kernel(%arg0: i32, %arg1: memref<16x64xf32, #tpu.memory_space<vmem>>, %arg2: memref<16x64xf32, #tpu.memory_space<vmem>>, %arg3: memref<16x64xf32, #tpu.memory_space<vmem>>, %arg4: memref<16x16xf32, #tpu.memory_space<vmem>>, %arg5: memref<2x1x64xf32, #tpu.memory_space<vmem>>, %arg6: memref<2x64x320xf32, #tpu.memory_space<vmem>>, %arg7: memref<2x64x64xf32, #tpu.memory_space<vmem>>, %arg8: memref<2x1x64xf32, #tpu.memory_space<vmem>>, %arg9: memref<2x64x256xf32, #tpu.memory_space<vmem>>, %arg10: memref<2x128x64xf32, #tpu.memory_space<vmem>>, %arg11: memref<1x64xf32, #tpu.memory_space<vmem>>, %arg12: memref<64x256xf32, #tpu.memory_space<vmem>>, %arg13: memref<2x256xf32, #tpu.memory_space<vmem>>) attributes {dimension_semantics = [#tpu.dimension_semantics<arbitrary>], iteration_bounds = array<i64: 1>, scalar_prefetch = 0 : i64, scratch_operands = 0 : i64, tpu.core_type = #tpu.core_type<tc>, window_params = [{pipeline_mode = #tpu.pipeline_mode<synchronous>, transform_indices = @transform_0, window_bounds = array<i64: 16, 64>}, {pipeline_mode = #tpu.pipeline_mode<synchronous>, transform_indices = @transform_1, window_bounds = array<i64: 16, 64>}, {pipeline_mode = #tpu.pipeline_mode<synchronous>, transform_indices = @transform_2, window_bounds = array<i64: 16, 64>}, {pipeline_mode = #tpu.pipeline_mode<synchronous>, transform_indices = @transform_3, window_bounds = array<i64: 16, 16>}, {pipeline_mode = #tpu.pipeline_mode<synchronous>, transform_indices = @transform_4, window_bounds = array<i64: 2, 1, 64>}, {pipeline_mode = #tpu.pipeline_mode<synchronous>, transform_indices = @transform_5, window_bounds = array<i64: 2, 64, 320>}, {pipeline_mode = #tpu.pipeline_mode<synchronous>, transform_indices = @transform_6, window_bounds = array<i64: 2, 64, 64>}, {pipeline_mode = #tpu.pipeline_mode<synchronous>, transform_indices = @transform_7, window_bounds = array<i64: 2, 1, 64>}, {pipeline_mode = #tpu.pipeline_mode<synchronous>, transform_indices = @transform_8, window_bounds = array<i64: 2, 64, 256>}, {pipeline_mode = #tpu.pipeline_mode<synchronous>, transform_indices = @transform_9, window_bounds = array<i64: 2, 128, 64>}, {pipeline_mode = #tpu.pipeline_mode<synchronous>, transform_indices = @transform_10, window_bounds = array<i64: 1, 64>}, {pipeline_mode = #tpu.pipeline_mode<synchronous>, transform_indices = @transform_11, window_bounds = array<i64: 64, 256>}, {pipeline_mode = #tpu.pipeline_mode<synchronous>, transform_indices = @transform_12, window_bounds = array<i64: 2, 256>}]} {
    %c0 = arith.constant 0 : index
    %c0_0 = arith.constant 0 : index
    %0 = vector.load %arg2[%c0, %c0_0] : memref<16x64xf32, #tpu.memory_space<vmem>>, vector<16x64xf32>
    %c0_1 = arith.constant 0 : index
    %c0_2 = arith.constant 0 : index
    %1 = vector.load %arg3[%c0_1, %c0_2] : memref<16x64xf32, #tpu.memory_space<vmem>>, vector<16x64xf32>
    %c0_3 = arith.constant 0 : index
    %c0_4 = arith.constant 0 : index
    %2 = vector.load %arg4[%c0_3, %c0_4] : memref<16x16xf32, #tpu.memory_space<vmem>>, vector<16x16xf32>
    %c0_5 = arith.constant 0 : index
    %c0_6 = arith.constant 0 : index
    %3 = vector.load %arg1[%c0_5, %c0_6] : memref<16x64xf32, #tpu.memory_space<vmem>>, vector<16x64xf32>
    %c0_7 = arith.constant 0 : index
    %c0_8 = arith.constant 0 : index
    %c0_9 = arith.constant 0 : index
    %4 = vector.load %arg5[%c0_7, %c0_8, %c0_9] : memref<2x1x64xf32, #tpu.memory_space<vmem>>, vector<1x1x64xf32>
    %5 = vector.shape_cast %4 : vector<1x1x64xf32> to vector<1x64xf32>
    %6 = arith.mulf %3, %3 : vector<16x64xf32>
    %cst = arith.constant dense<0.000000e+00> : vector<16xf32>
    %7 = vector.multi_reduction <add>, %6, %cst [1] : vector<16x64xf32> to vector<16xf32>
    %8 = vector.shape_cast %7 : vector<16xf32> to vector<16x1xf32>
    %cst_10 = arith.constant 6.400000e+01 : f32
    %9 = vector.broadcast %cst_10 : f32 to vector<16x1xf32>
    %10 = arith.divf %8, %9 : vector<16x1xf32>
    %cst_11 = arith.constant 9.99999974E-6 : f32
    %11 = vector.broadcast %cst_11 : f32 to vector<16x1xf32>
    %12 = arith.addf %10, %11 : vector<16x1xf32>
    %13 = math.rsqrt %12 : vector<16x1xf32>
    %14 = vector.broadcast %13 : vector<16x1xf32> to vector<16x64xf32>
    %15 = arith.mulf %3, %14 : vector<16x64xf32>
    %16 = vector.broadcast %5 : vector<1x64xf32> to vector<16x64xf32>
    %17 = arith.mulf %15, %16 : vector<16x64xf32>
    %c0_12 = arith.constant 0 : index
    %c0_13 = arith.constant 0 : index
    %c0_14 = arith.constant 0 : index
    %18 = vector.load %arg6[%c0_12, %c0_13, %c0_14] : memref<2x64x320xf32, #tpu.memory_space<vmem>>, vector<1x64x320xf32>
    %19 = vector.shape_cast %18 : vector<1x64x320xf32> to vector<64x320xf32>
    %cst_15 = arith.constant dense<0.000000e+00> : vector<16x320xf32>
    %20 = tpu.matmul %17, %19, %cst_15 {dimension_numbers = #tpu.dot_dimension_numbers<[1], [0], [0], [1], [0, 0, 1, 1], [], []>} : vector<16x64xf32>, vector<64x320xf32>, vector<16x320xf32> -> vector<16x320xf32>
    %21 = vector.extract_strided_slice %20 {offsets = [0, 0], sizes = [16, 64], strides = [1, 1]} : vector<16x320xf32> to vector<16x64xf32>
    %22 = arith.mulf %21, %0 : vector<16x64xf32>
    %23 = vector.extract_strided_slice %20 {offsets = [0, 64], sizes = [16, 64], strides = [1, 1]} : vector<16x320xf32> to vector<16x64xf32>
    %24 = arith.mulf %23, %1 : vector<16x64xf32>
    %25 = arith.addf %22, %24 : vector<16x64xf32>
    %26 = vector.extract_strided_slice %20 {offsets = [0, 128], sizes = [16, 64], strides = [1, 1]} : vector<16x320xf32> to vector<16x64xf32>
    %27 = arith.mulf %26, %0 : vector<16x64xf32>
    %28 = vector.extract_strided_slice %20 {offsets = [0, 192], sizes = [16, 64], strides = [1, 1]} : vector<16x320xf32> to vector<16x64xf32>
    %29 = arith.mulf %28, %1 : vector<16x64xf32>
    %30 = arith.addf %27, %29 : vector<16x64xf32>
    %31 = vector.extract_strided_slice %20 {offsets = [0, 256], sizes = [16, 64], strides = [1, 1]} : vector<16x320xf32> to vector<16x64xf32>
    %32 = vector.extract_strided_slice %25 {offsets = [0, 0], sizes = [16, 16], strides = [1, 1]} : vector<16x64xf32> to vector<16x16xf32>
    %33 = vector.extract_strided_slice %30 {offsets = [0, 0], sizes = [16, 16], strides = [1, 1]} : vector<16x64xf32> to vector<16x16xf32>
    %34 = vector.extract_strided_slice %31 {offsets = [0, 0], sizes = [16, 16], strides = [1, 1]} : vector<16x64xf32> to vector<16x16xf32>
    "tpu.trace_start"() <{level = 10 : i32, message = "qd,kd->qk"}> : () -> ()
    %cst_16 = arith.constant dense<0.000000e+00> : vector<16x16xf32>
    %35 = tpu.matmul %32, %33, %cst_16 {dimension_numbers = #tpu.dot_dimension_numbers<[1], [1], [0], [0], [0, 0, 1, 0], [], []>} : vector<16x16xf32>, vector<16x16xf32>, vector<16x16xf32> -> vector<16x16xf32>
    "tpu.trace_stop"() : () -> ()
    %cst_17 = arith.constant 2.500000e-01 : f32
    %36 = vector.broadcast %cst_17 : f32 to vector<16x16xf32>
    %37 = arith.mulf %35, %36 : vector<16x16xf32>
    %38 = arith.addf %37, %2 : vector<16x16xf32>
    %cst_18 = arith.constant dense<0xFF800000> : vector<16xf32>
    %39 = vector.multi_reduction <maximumf>, %38, %cst_18 [1] : vector<16x16xf32> to vector<16xf32>
    %40 = vector.shape_cast %39 : vector<16xf32> to vector<16x1xf32>
    %41 = vector.broadcast %40 : vector<16x1xf32> to vector<16x16xf32>
    %42 = arith.subf %38, %41 : vector<16x16xf32>
    %43 = math.exp %42 : vector<16x16xf32>
    %cst_19 = arith.constant dense<0.000000e+00> : vector<16xf32>
    %44 = vector.multi_reduction <add>, %43, %cst_19 [1] : vector<16x16xf32> to vector<16xf32>
    %45 = vector.shape_cast %44 : vector<16xf32> to vector<16x1xf32>
    %46 = vector.broadcast %45 : vector<16x1xf32> to vector<16x16xf32>
    %47 = arith.divf %43, %46 : vector<16x16xf32>
    %cst_20 = arith.constant dense<0.000000e+00> : vector<16x16xf32>
    %48 = tpu.matmul %47, %34, %cst_20 {dimension_numbers = #tpu.dot_dimension_numbers<[1], [0], [0], [1], [0, 0, 1, 1], [], []>} : vector<16x16xf32>, vector<16x16xf32>, vector<16x16xf32> -> vector<16x16xf32>
    %49 = vector.extract_strided_slice %25 {offsets = [0, 16], sizes = [16, 16], strides = [1, 1]} : vector<16x64xf32> to vector<16x16xf32>
    %50 = vector.extract_strided_slice %30 {offsets = [0, 16], sizes = [16, 16], strides = [1, 1]} : vector<16x64xf32> to vector<16x16xf32>
    %51 = vector.extract_strided_slice %31 {offsets = [0, 16], sizes = [16, 16], strides = [1, 1]} : vector<16x64xf32> to vector<16x16xf32>
    "tpu.trace_start"() <{level = 10 : i32, message = "qd,kd->qk"}> : () -> ()
    %cst_21 = arith.constant dense<0.000000e+00> : vector<16x16xf32>
    %52 = tpu.matmul %49, %50, %cst_21 {dimension_numbers = #tpu.dot_dimension_numbers<[1], [1], [0], [0], [0, 0, 1, 0], [], []>} : vector<16x16xf32>, vector<16x16xf32>, vector<16x16xf32> -> vector<16x16xf32>
    "tpu.trace_stop"() : () -> ()
    %cst_22 = arith.constant 2.500000e-01 : f32
    %53 = vector.broadcast %cst_22 : f32 to vector<16x16xf32>
    %54 = arith.mulf %52, %53 : vector<16x16xf32>
    %55 = arith.addf %54, %2 : vector<16x16xf32>
    %cst_23 = arith.constant dense<0xFF800000> : vector<16xf32>
    %56 = vector.multi_reduction <maximumf>, %55, %cst_23 [1] : vector<16x16xf32> to vector<16xf32>
    %57 = vector.shape_cast %56 : vector<16xf32> to vector<16x1xf32>
    %58 = vector.broadcast %57 : vector<16x1xf32> to vector<16x16xf32>
    %59 = arith.subf %55, %58 : vector<16x16xf32>
    %60 = math.exp %59 : vector<16x16xf32>
    %cst_24 = arith.constant dense<0.000000e+00> : vector<16xf32>
    %61 = vector.multi_reduction <add>, %60, %cst_24 [1] : vector<16x16xf32> to vector<16xf32>
    %62 = vector.shape_cast %61 : vector<16xf32> to vector<16x1xf32>
    %63 = vector.broadcast %62 : vector<16x1xf32> to vector<16x16xf32>
    %64 = arith.divf %60, %63 : vector<16x16xf32>
    %cst_25 = arith.constant dense<0.000000e+00> : vector<16x16xf32>
    %65 = tpu.matmul %64, %51, %cst_25 {dimension_numbers = #tpu.dot_dimension_numbers<[1], [0], [0], [1], [0, 0, 1, 1], [], []>} : vector<16x16xf32>, vector<16x16xf32>, vector<16x16xf32> -> vector<16x16xf32>
    %66 = vector.extract_strided_slice %25 {offsets = [0, 32], sizes = [16, 16], strides = [1, 1]} : vector<16x64xf32> to vector<16x16xf32>
    %67 = vector.extract_strided_slice %30 {offsets = [0, 32], sizes = [16, 16], strides = [1, 1]} : vector<16x64xf32> to vector<16x16xf32>
    %68 = vector.extract_strided_slice %31 {offsets = [0, 32], sizes = [16, 16], strides = [1, 1]} : vector<16x64xf32> to vector<16x16xf32>
    "tpu.trace_start"() <{level = 10 : i32, message = "qd,kd->qk"}> : () -> ()
    %cst_26 = arith.constant dense<0.000000e+00> : vector<16x16xf32>
    %69 = tpu.matmul %66, %67, %cst_26 {dimension_numbers = #tpu.dot_dimension_numbers<[1], [1], [0], [0], [0, 0, 1, 0], [], []>} : vector<16x16xf32>, vector<16x16xf32>, vector<16x16xf32> -> vector<16x16xf32>
    "tpu.trace_stop"() : () -> ()
    %cst_27 = arith.constant 2.500000e-01 : f32
    %70 = vector.broadcast %cst_27 : f32 to vector<16x16xf32>
    %71 = arith.mulf %69, %70 : vector<16x16xf32>
    %72 = arith.addf %71, %2 : vector<16x16xf32>
    %cst_28 = arith.constant dense<0xFF800000> : vector<16xf32>
    %73 = vector.multi_reduction <maximumf>, %72, %cst_28 [1] : vector<16x16xf32> to vector<16xf32>
    %74 = vector.shape_cast %73 : vector<16xf32> to vector<16x1xf32>
    %75 = vector.broadcast %74 : vector<16x1xf32> to vector<16x16xf32>
    %76 = arith.subf %72, %75 : vector<16x16xf32>
    %77 = math.exp %76 : vector<16x16xf32>
    %cst_29 = arith.constant dense<0.000000e+00> : vector<16xf32>
    %78 = vector.multi_reduction <add>, %77, %cst_29 [1] : vector<16x16xf32> to vector<16xf32>
    %79 = vector.shape_cast %78 : vector<16xf32> to vector<16x1xf32>
    %80 = vector.broadcast %79 : vector<16x1xf32> to vector<16x16xf32>
    %81 = arith.divf %77, %80 : vector<16x16xf32>
    %cst_30 = arith.constant dense<0.000000e+00> : vector<16x16xf32>
    %82 = tpu.matmul %81, %68, %cst_30 {dimension_numbers = #tpu.dot_dimension_numbers<[1], [0], [0], [1], [0, 0, 1, 1], [], []>} : vector<16x16xf32>, vector<16x16xf32>, vector<16x16xf32> -> vector<16x16xf32>
    %83 = vector.extract_strided_slice %25 {offsets = [0, 48], sizes = [16, 16], strides = [1, 1]} : vector<16x64xf32> to vector<16x16xf32>
    %84 = vector.extract_strided_slice %30 {offsets = [0, 48], sizes = [16, 16], strides = [1, 1]} : vector<16x64xf32> to vector<16x16xf32>
    %85 = vector.extract_strided_slice %31 {offsets = [0, 48], sizes = [16, 16], strides = [1, 1]} : vector<16x64xf32> to vector<16x16xf32>
    "tpu.trace_start"() <{level = 10 : i32, message = "qd,kd->qk"}> : () -> ()
    %cst_31 = arith.constant dense<0.000000e+00> : vector<16x16xf32>
    %86 = tpu.matmul %83, %84, %cst_31 {dimension_numbers = #tpu.dot_dimension_numbers<[1], [1], [0], [0], [0, 0, 1, 0], [], []>} : vector<16x16xf32>, vector<16x16xf32>, vector<16x16xf32> -> vector<16x16xf32>
    "tpu.trace_stop"() : () -> ()
    %cst_32 = arith.constant 2.500000e-01 : f32
    %87 = vector.broadcast %cst_32 : f32 to vector<16x16xf32>
    %88 = arith.mulf %86, %87 : vector<16x16xf32>
    %89 = arith.addf %88, %2 : vector<16x16xf32>
    %cst_33 = arith.constant dense<0xFF800000> : vector<16xf32>
    %90 = vector.multi_reduction <maximumf>, %89, %cst_33 [1] : vector<16x16xf32> to vector<16xf32>
    %91 = vector.shape_cast %90 : vector<16xf32> to vector<16x1xf32>
    %92 = vector.broadcast %91 : vector<16x1xf32> to vector<16x16xf32>
    %93 = arith.subf %89, %92 : vector<16x16xf32>
    %94 = math.exp %93 : vector<16x16xf32>
    %cst_34 = arith.constant dense<0.000000e+00> : vector<16xf32>
    %95 = vector.multi_reduction <add>, %94, %cst_34 [1] : vector<16x16xf32> to vector<16xf32>
    %96 = vector.shape_cast %95 : vector<16xf32> to vector<16x1xf32>
    %97 = vector.broadcast %96 : vector<16x1xf32> to vector<16x16xf32>
    %98 = arith.divf %94, %97 : vector<16x16xf32>
    %cst_35 = arith.constant dense<0.000000e+00> : vector<16x16xf32>
    %99 = tpu.matmul %98, %85, %cst_35 {dimension_numbers = #tpu.dot_dimension_numbers<[1], [0], [0], [1], [0, 0, 1, 1], [], []>} : vector<16x16xf32>, vector<16x16xf32>, vector<16x16xf32> -> vector<16x16xf32>
    %100 = tpu.concatenate %48, %65, %82, %99 in 1 : vector<16x16xf32>, vector<16x16xf32>, vector<16x16xf32>, vector<16x16xf32> -> vector<16x64xf32>
    %c0_36 = arith.constant 0 : index
    %c0_37 = arith.constant 0 : index
    %c0_38 = arith.constant 0 : index
    %101 = vector.load %arg7[%c0_36, %c0_37, %c0_38] : memref<2x64x64xf32, #tpu.memory_space<vmem>>, vector<1x64x64xf32>
    %102 = vector.shape_cast %101 : vector<1x64x64xf32> to vector<64x64xf32>
    %cst_39 = arith.constant dense<0.000000e+00> : vector<16x64xf32>
    %103 = tpu.matmul %100, %102, %cst_39 {dimension_numbers = #tpu.dot_dimension_numbers<[1], [0], [0], [1], [0, 0, 1, 1], [], []>} : vector<16x64xf32>, vector<64x64xf32>, vector<16x64xf32> -> vector<16x64xf32>
    %104 = arith.addf %3, %103 : vector<16x64xf32>
    %c0_40 = arith.constant 0 : index
    %c0_41 = arith.constant 0 : index
    %c0_42 = arith.constant 0 : index
    %105 = vector.load %arg8[%c0_40, %c0_41, %c0_42] : memref<2x1x64xf32, #tpu.memory_space<vmem>>, vector<1x1x64xf32>
    %106 = vector.shape_cast %105 : vector<1x1x64xf32> to vector<1x64xf32>
    %107 = arith.mulf %104, %104 : vector<16x64xf32>
    %cst_43 = arith.constant dense<0.000000e+00> : vector<16xf32>
    %108 = vector.multi_reduction <add>, %107, %cst_43 [1] : vector<16x64xf32> to vector<16xf32>
    %109 = vector.shape_cast %108 : vector<16xf32> to vector<16x1xf32>
    %cst_44 = arith.constant 6.400000e+01 : f32
    %110 = vector.broadcast %cst_44 : f32 to vector<16x1xf32>
    %111 = arith.divf %109, %110 : vector<16x1xf32>
    %cst_45 = arith.constant 9.99999974E-6 : f32
    %112 = vector.broadcast %cst_45 : f32 to vector<16x1xf32>
    %113 = arith.addf %111, %112 : vector<16x1xf32>
    %114 = math.rsqrt %113 : vector<16x1xf32>
    %115 = vector.broadcast %114 : vector<16x1xf32> to vector<16x64xf32>
    %116 = arith.mulf %104, %115 : vector<16x64xf32>
    %117 = vector.broadcast %106 : vector<1x64xf32> to vector<16x64xf32>
    %118 = arith.mulf %116, %117 : vector<16x64xf32>
    %c0_46 = arith.constant 0 : index
    %c0_47 = arith.constant 0 : index
    %c0_48 = arith.constant 0 : index
    %119 = vector.load %arg9[%c0_46, %c0_47, %c0_48] : memref<2x64x256xf32, #tpu.memory_space<vmem>>, vector<1x64x256xf32>
    %120 = vector.shape_cast %119 : vector<1x64x256xf32> to vector<64x256xf32>
    %cst_49 = arith.constant dense<0.000000e+00> : vector<16x256xf32>
    %121 = tpu.matmul %118, %120, %cst_49 {dimension_numbers = #tpu.dot_dimension_numbers<[1], [0], [0], [1], [0, 0, 1, 1], [], []>} : vector<16x64xf32>, vector<64x256xf32>, vector<16x256xf32> -> vector<16x256xf32>
    %122 = vector.extract_strided_slice %121 {offsets = [0, 0], sizes = [16, 128], strides = [1, 1]} : vector<16x256xf32> to vector<16x128xf32>
    %123 = vector.extract_strided_slice %121 {offsets = [0, 128], sizes = [16, 128], strides = [1, 1]} : vector<16x256xf32> to vector<16x128xf32>
    %124 = arith.negf %122 : vector<16x128xf32>
    %125 = math.exp %124 : vector<16x128xf32>
    %cst_50 = arith.constant 1.000000e+00 : f32
    %126 = vector.broadcast %cst_50 : f32 to vector<16x128xf32>
    %127 = arith.addf %126, %125 : vector<16x128xf32>
    %128 = arith.divf %126, %127 : vector<16x128xf32>
    %129 = arith.mulf %122, %128 : vector<16x128xf32>
    %130 = arith.mulf %129, %123 : vector<16x128xf32>
    %c0_51 = arith.constant 0 : index
    %c0_52 = arith.constant 0 : index
    %c0_53 = arith.constant 0 : index
    %131 = vector.load %arg10[%c0_51, %c0_52, %c0_53] : memref<2x128x64xf32, #tpu.memory_space<vmem>>, vector<1x128x64xf32>
    %132 = vector.shape_cast %131 : vector<1x128x64xf32> to vector<128x64xf32>
    %cst_54 = arith.constant dense<0.000000e+00> : vector<16x64xf32>
    %133 = tpu.matmul %130, %132, %cst_54 {dimension_numbers = #tpu.dot_dimension_numbers<[1], [0], [0], [1], [0, 0, 1, 1], [], []>} : vector<16x128xf32>, vector<128x64xf32>, vector<16x64xf32> -> vector<16x64xf32>
    %134 = arith.addf %104, %133 : vector<16x64xf32>
    %c1 = arith.constant 1 : index
    %c0_55 = arith.constant 0 : index
    %c0_56 = arith.constant 0 : index
    %135 = vector.load %arg5[%c1, %c0_55, %c0_56] : memref<2x1x64xf32, #tpu.memory_space<vmem>>, vector<1x1x64xf32>
    %136 = vector.shape_cast %135 : vector<1x1x64xf32> to vector<1x64xf32>
    %137 = arith.mulf %134, %134 : vector<16x64xf32>
    %cst_57 = arith.constant dense<0.000000e+00> : vector<16xf32>
    %138 = vector.multi_reduction <add>, %137, %cst_57 [1] : vector<16x64xf32> to vector<16xf32>
    %139 = vector.shape_cast %138 : vector<16xf32> to vector<16x1xf32>
    %cst_58 = arith.constant 6.400000e+01 : f32
    %140 = vector.broadcast %cst_58 : f32 to vector<16x1xf32>
    %141 = arith.divf %139, %140 : vector<16x1xf32>
    %cst_59 = arith.constant 9.99999974E-6 : f32
    %142 = vector.broadcast %cst_59 : f32 to vector<16x1xf32>
    %143 = arith.addf %141, %142 : vector<16x1xf32>
    %144 = math.rsqrt %143 : vector<16x1xf32>
    %145 = vector.broadcast %144 : vector<16x1xf32> to vector<16x64xf32>
    %146 = arith.mulf %134, %145 : vector<16x64xf32>
    %147 = vector.broadcast %136 : vector<1x64xf32> to vector<16x64xf32>
    %148 = arith.mulf %146, %147 : vector<16x64xf32>
    %c1_60 = arith.constant 1 : index
    %c0_61 = arith.constant 0 : index
    %c0_62 = arith.constant 0 : index
    %149 = vector.load %arg6[%c1_60, %c0_61, %c0_62] : memref<2x64x320xf32, #tpu.memory_space<vmem>>, vector<1x64x320xf32>
    %150 = vector.shape_cast %149 : vector<1x64x320xf32> to vector<64x320xf32>
    %cst_63 = arith.constant dense<0.000000e+00> : vector<16x320xf32>
    %151 = tpu.matmul %148, %150, %cst_63 {dimension_numbers = #tpu.dot_dimension_numbers<[1], [0], [0], [1], [0, 0, 1, 1], [], []>} : vector<16x64xf32>, vector<64x320xf32>, vector<16x320xf32> -> vector<16x320xf32>
    %152 = vector.extract_strided_slice %151 {offsets = [0, 0], sizes = [16, 64], strides = [1, 1]} : vector<16x320xf32> to vector<16x64xf32>
    %153 = arith.mulf %152, %0 : vector<16x64xf32>
    %154 = vector.extract_strided_slice %151 {offsets = [0, 64], sizes = [16, 64], strides = [1, 1]} : vector<16x320xf32> to vector<16x64xf32>
    %155 = arith.mulf %154, %1 : vector<16x64xf32>
    %156 = arith.addf %153, %155 : vector<16x64xf32>
    %157 = vector.extract_strided_slice %151 {offsets = [0, 128], sizes = [16, 64], strides = [1, 1]} : vector<16x320xf32> to vector<16x64xf32>
    %158 = arith.mulf %157, %0 : vector<16x64xf32>
    %159 = vector.extract_strided_slice %151 {offsets = [0, 192], sizes = [16, 64], strides = [1, 1]} : vector<16x320xf32> to vector<16x64xf32>
    %160 = arith.mulf %159, %1 : vector<16x64xf32>
    %161 = arith.addf %158, %160 : vector<16x64xf32>
    %162 = vector.extract_strided_slice %151 {offsets = [0, 256], sizes = [16, 64], strides = [1, 1]} : vector<16x320xf32> to vector<16x64xf32>
    %163 = vector.extract_strided_slice %156 {offsets = [0, 0], sizes = [16, 16], strides = [1, 1]} : vector<16x64xf32> to vector<16x16xf32>
    %164 = vector.extract_strided_slice %161 {offsets = [0, 0], sizes = [16, 16], strides = [1, 1]} : vector<16x64xf32> to vector<16x16xf32>
    %165 = vector.extract_strided_slice %162 {offsets = [0, 0], sizes = [16, 16], strides = [1, 1]} : vector<16x64xf32> to vector<16x16xf32>
    "tpu.trace_start"() <{level = 10 : i32, message = "qd,kd->qk"}> : () -> ()
    %cst_64 = arith.constant dense<0.000000e+00> : vector<16x16xf32>
    %166 = tpu.matmul %163, %164, %cst_64 {dimension_numbers = #tpu.dot_dimension_numbers<[1], [1], [0], [0], [0, 0, 1, 0], [], []>} : vector<16x16xf32>, vector<16x16xf32>, vector<16x16xf32> -> vector<16x16xf32>
    "tpu.trace_stop"() : () -> ()
    %cst_65 = arith.constant 2.500000e-01 : f32
    %167 = vector.broadcast %cst_65 : f32 to vector<16x16xf32>
    %168 = arith.mulf %166, %167 : vector<16x16xf32>
    %169 = arith.addf %168, %2 : vector<16x16xf32>
    %cst_66 = arith.constant dense<0xFF800000> : vector<16xf32>
    %170 = vector.multi_reduction <maximumf>, %169, %cst_66 [1] : vector<16x16xf32> to vector<16xf32>
    %171 = vector.shape_cast %170 : vector<16xf32> to vector<16x1xf32>
    %172 = vector.broadcast %171 : vector<16x1xf32> to vector<16x16xf32>
    %173 = arith.subf %169, %172 : vector<16x16xf32>
    %174 = math.exp %173 : vector<16x16xf32>
    %cst_67 = arith.constant dense<0.000000e+00> : vector<16xf32>
    %175 = vector.multi_reduction <add>, %174, %cst_67 [1] : vector<16x16xf32> to vector<16xf32>
    %176 = vector.shape_cast %175 : vector<16xf32> to vector<16x1xf32>
    %177 = vector.broadcast %176 : vector<16x1xf32> to vector<16x16xf32>
    %178 = arith.divf %174, %177 : vector<16x16xf32>
    %cst_68 = arith.constant dense<0.000000e+00> : vector<16x16xf32>
    %179 = tpu.matmul %178, %165, %cst_68 {dimension_numbers = #tpu.dot_dimension_numbers<[1], [0], [0], [1], [0, 0, 1, 1], [], []>} : vector<16x16xf32>, vector<16x16xf32>, vector<16x16xf32> -> vector<16x16xf32>
    %180 = vector.extract_strided_slice %156 {offsets = [0, 16], sizes = [16, 16], strides = [1, 1]} : vector<16x64xf32> to vector<16x16xf32>
    %181 = vector.extract_strided_slice %161 {offsets = [0, 16], sizes = [16, 16], strides = [1, 1]} : vector<16x64xf32> to vector<16x16xf32>
    %182 = vector.extract_strided_slice %162 {offsets = [0, 16], sizes = [16, 16], strides = [1, 1]} : vector<16x64xf32> to vector<16x16xf32>
    "tpu.trace_start"() <{level = 10 : i32, message = "qd,kd->qk"}> : () -> ()
    %cst_69 = arith.constant dense<0.000000e+00> : vector<16x16xf32>
    %183 = tpu.matmul %180, %181, %cst_69 {dimension_numbers = #tpu.dot_dimension_numbers<[1], [1], [0], [0], [0, 0, 1, 0], [], []>} : vector<16x16xf32>, vector<16x16xf32>, vector<16x16xf32> -> vector<16x16xf32>
    "tpu.trace_stop"() : () -> ()
    %cst_70 = arith.constant 2.500000e-01 : f32
    %184 = vector.broadcast %cst_70 : f32 to vector<16x16xf32>
    %185 = arith.mulf %183, %184 : vector<16x16xf32>
    %186 = arith.addf %185, %2 : vector<16x16xf32>
    %cst_71 = arith.constant dense<0xFF800000> : vector<16xf32>
    %187 = vector.multi_reduction <maximumf>, %186, %cst_71 [1] : vector<16x16xf32> to vector<16xf32>
    %188 = vector.shape_cast %187 : vector<16xf32> to vector<16x1xf32>
    %189 = vector.broadcast %188 : vector<16x1xf32> to vector<16x16xf32>
    %190 = arith.subf %186, %189 : vector<16x16xf32>
    %191 = math.exp %190 : vector<16x16xf32>
    %cst_72 = arith.constant dense<0.000000e+00> : vector<16xf32>
    %192 = vector.multi_reduction <add>, %191, %cst_72 [1] : vector<16x16xf32> to vector<16xf32>
    %193 = vector.shape_cast %192 : vector<16xf32> to vector<16x1xf32>
    %194 = vector.broadcast %193 : vector<16x1xf32> to vector<16x16xf32>
    %195 = arith.divf %191, %194 : vector<16x16xf32>
    %cst_73 = arith.constant dense<0.000000e+00> : vector<16x16xf32>
    %196 = tpu.matmul %195, %182, %cst_73 {dimension_numbers = #tpu.dot_dimension_numbers<[1], [0], [0], [1], [0, 0, 1, 1], [], []>} : vector<16x16xf32>, vector<16x16xf32>, vector<16x16xf32> -> vector<16x16xf32>
    %197 = vector.extract_strided_slice %156 {offsets = [0, 32], sizes = [16, 16], strides = [1, 1]} : vector<16x64xf32> to vector<16x16xf32>
    %198 = vector.extract_strided_slice %161 {offsets = [0, 32], sizes = [16, 16], strides = [1, 1]} : vector<16x64xf32> to vector<16x16xf32>
    %199 = vector.extract_strided_slice %162 {offsets = [0, 32], sizes = [16, 16], strides = [1, 1]} : vector<16x64xf32> to vector<16x16xf32>
    "tpu.trace_start"() <{level = 10 : i32, message = "qd,kd->qk"}> : () -> ()
    %cst_74 = arith.constant dense<0.000000e+00> : vector<16x16xf32>
    %200 = tpu.matmul %197, %198, %cst_74 {dimension_numbers = #tpu.dot_dimension_numbers<[1], [1], [0], [0], [0, 0, 1, 0], [], []>} : vector<16x16xf32>, vector<16x16xf32>, vector<16x16xf32> -> vector<16x16xf32>
    "tpu.trace_stop"() : () -> ()
    %cst_75 = arith.constant 2.500000e-01 : f32
    %201 = vector.broadcast %cst_75 : f32 to vector<16x16xf32>
    %202 = arith.mulf %200, %201 : vector<16x16xf32>
    %203 = arith.addf %202, %2 : vector<16x16xf32>
    %cst_76 = arith.constant dense<0xFF800000> : vector<16xf32>
    %204 = vector.multi_reduction <maximumf>, %203, %cst_76 [1] : vector<16x16xf32> to vector<16xf32>
    %205 = vector.shape_cast %204 : vector<16xf32> to vector<16x1xf32>
    %206 = vector.broadcast %205 : vector<16x1xf32> to vector<16x16xf32>
    %207 = arith.subf %203, %206 : vector<16x16xf32>
    %208 = math.exp %207 : vector<16x16xf32>
    %cst_77 = arith.constant dense<0.000000e+00> : vector<16xf32>
    %209 = vector.multi_reduction <add>, %208, %cst_77 [1] : vector<16x16xf32> to vector<16xf32>
    %210 = vector.shape_cast %209 : vector<16xf32> to vector<16x1xf32>
    %211 = vector.broadcast %210 : vector<16x1xf32> to vector<16x16xf32>
    %212 = arith.divf %208, %211 : vector<16x16xf32>
    %cst_78 = arith.constant dense<0.000000e+00> : vector<16x16xf32>
    %213 = tpu.matmul %212, %199, %cst_78 {dimension_numbers = #tpu.dot_dimension_numbers<[1], [0], [0], [1], [0, 0, 1, 1], [], []>} : vector<16x16xf32>, vector<16x16xf32>, vector<16x16xf32> -> vector<16x16xf32>
    %214 = vector.extract_strided_slice %156 {offsets = [0, 48], sizes = [16, 16], strides = [1, 1]} : vector<16x64xf32> to vector<16x16xf32>
    %215 = vector.extract_strided_slice %161 {offsets = [0, 48], sizes = [16, 16], strides = [1, 1]} : vector<16x64xf32> to vector<16x16xf32>
    %216 = vector.extract_strided_slice %162 {offsets = [0, 48], sizes = [16, 16], strides = [1, 1]} : vector<16x64xf32> to vector<16x16xf32>
    "tpu.trace_start"() <{level = 10 : i32, message = "qd,kd->qk"}> : () -> ()
    %cst_79 = arith.constant dense<0.000000e+00> : vector<16x16xf32>
    %217 = tpu.matmul %214, %215, %cst_79 {dimension_numbers = #tpu.dot_dimension_numbers<[1], [1], [0], [0], [0, 0, 1, 0], [], []>} : vector<16x16xf32>, vector<16x16xf32>, vector<16x16xf32> -> vector<16x16xf32>
    "tpu.trace_stop"() : () -> ()
    %cst_80 = arith.constant 2.500000e-01 : f32
    %218 = vector.broadcast %cst_80 : f32 to vector<16x16xf32>
    %219 = arith.mulf %217, %218 : vector<16x16xf32>
    %220 = arith.addf %219, %2 : vector<16x16xf32>
    %cst_81 = arith.constant dense<0xFF800000> : vector<16xf32>
    %221 = vector.multi_reduction <maximumf>, %220, %cst_81 [1] : vector<16x16xf32> to vector<16xf32>
    %222 = vector.shape_cast %221 : vector<16xf32> to vector<16x1xf32>
    %223 = vector.broadcast %222 : vector<16x1xf32> to vector<16x16xf32>
    %224 = arith.subf %220, %223 : vector<16x16xf32>
    %225 = math.exp %224 : vector<16x16xf32>
    %cst_82 = arith.constant dense<0.000000e+00> : vector<16xf32>
    %226 = vector.multi_reduction <add>, %225, %cst_82 [1] : vector<16x16xf32> to vector<16xf32>
    %227 = vector.shape_cast %226 : vector<16xf32> to vector<16x1xf32>
    %228 = vector.broadcast %227 : vector<16x1xf32> to vector<16x16xf32>
    %229 = arith.divf %225, %228 : vector<16x16xf32>
    %cst_83 = arith.constant dense<0.000000e+00> : vector<16x16xf32>
    %230 = tpu.matmul %229, %216, %cst_83 {dimension_numbers = #tpu.dot_dimension_numbers<[1], [0], [0], [1], [0, 0, 1, 1], [], []>} : vector<16x16xf32>, vector<16x16xf32>, vector<16x16xf32> -> vector<16x16xf32>
    %231 = tpu.concatenate %179, %196, %213, %230 in 1 : vector<16x16xf32>, vector<16x16xf32>, vector<16x16xf32>, vector<16x16xf32> -> vector<16x64xf32>
    %c1_84 = arith.constant 1 : index
    %c0_85 = arith.constant 0 : index
    %c0_86 = arith.constant 0 : index
    %232 = vector.load %arg7[%c1_84, %c0_85, %c0_86] : memref<2x64x64xf32, #tpu.memory_space<vmem>>, vector<1x64x64xf32>
    %233 = vector.shape_cast %232 : vector<1x64x64xf32> to vector<64x64xf32>
    %cst_87 = arith.constant dense<0.000000e+00> : vector<16x64xf32>
    %234 = tpu.matmul %231, %233, %cst_87 {dimension_numbers = #tpu.dot_dimension_numbers<[1], [0], [0], [1], [0, 0, 1, 1], [], []>} : vector<16x64xf32>, vector<64x64xf32>, vector<16x64xf32> -> vector<16x64xf32>
    %235 = arith.addf %134, %234 : vector<16x64xf32>
    %c1_88 = arith.constant 1 : index
    %c0_89 = arith.constant 0 : index
    %c0_90 = arith.constant 0 : index
    %236 = vector.load %arg8[%c1_88, %c0_89, %c0_90] : memref<2x1x64xf32, #tpu.memory_space<vmem>>, vector<1x1x64xf32>
    %237 = vector.shape_cast %236 : vector<1x1x64xf32> to vector<1x64xf32>
    %238 = arith.mulf %235, %235 : vector<16x64xf32>
    %cst_91 = arith.constant dense<0.000000e+00> : vector<16xf32>
    %239 = vector.multi_reduction <add>, %238, %cst_91 [1] : vector<16x64xf32> to vector<16xf32>
    %240 = vector.shape_cast %239 : vector<16xf32> to vector<16x1xf32>
    %cst_92 = arith.constant 6.400000e+01 : f32
    %241 = vector.broadcast %cst_92 : f32 to vector<16x1xf32>
    %242 = arith.divf %240, %241 : vector<16x1xf32>
    %cst_93 = arith.constant 9.99999974E-6 : f32
    %243 = vector.broadcast %cst_93 : f32 to vector<16x1xf32>
    %244 = arith.addf %242, %243 : vector<16x1xf32>
    %245 = math.rsqrt %244 : vector<16x1xf32>
    %246 = vector.broadcast %245 : vector<16x1xf32> to vector<16x64xf32>
    %247 = arith.mulf %235, %246 : vector<16x64xf32>
    %248 = vector.broadcast %237 : vector<1x64xf32> to vector<16x64xf32>
    %249 = arith.mulf %247, %248 : vector<16x64xf32>
    %c1_94 = arith.constant 1 : index
    %c0_95 = arith.constant 0 : index
    %c0_96 = arith.constant 0 : index
    %250 = vector.load %arg9[%c1_94, %c0_95, %c0_96] : memref<2x64x256xf32, #tpu.memory_space<vmem>>, vector<1x64x256xf32>
    %251 = vector.shape_cast %250 : vector<1x64x256xf32> to vector<64x256xf32>
    %cst_97 = arith.constant dense<0.000000e+00> : vector<16x256xf32>
    %252 = tpu.matmul %249, %251, %cst_97 {dimension_numbers = #tpu.dot_dimension_numbers<[1], [0], [0], [1], [0, 0, 1, 1], [], []>} : vector<16x64xf32>, vector<64x256xf32>, vector<16x256xf32> -> vector<16x256xf32>
    %253 = vector.extract_strided_slice %252 {offsets = [0, 0], sizes = [16, 128], strides = [1, 1]} : vector<16x256xf32> to vector<16x128xf32>
    %254 = vector.extract_strided_slice %252 {offsets = [0, 128], sizes = [16, 128], strides = [1, 1]} : vector<16x256xf32> to vector<16x128xf32>
    %255 = arith.negf %253 : vector<16x128xf32>
    %256 = math.exp %255 : vector<16x128xf32>
    %cst_98 = arith.constant 1.000000e+00 : f32
    %257 = vector.broadcast %cst_98 : f32 to vector<16x128xf32>
    %258 = arith.addf %257, %256 : vector<16x128xf32>
    %259 = arith.divf %257, %258 : vector<16x128xf32>
    %260 = arith.mulf %253, %259 : vector<16x128xf32>
    %261 = arith.mulf %260, %254 : vector<16x128xf32>
    %c1_99 = arith.constant 1 : index
    %c0_100 = arith.constant 0 : index
    %c0_101 = arith.constant 0 : index
    %262 = vector.load %arg10[%c1_99, %c0_100, %c0_101] : memref<2x128x64xf32, #tpu.memory_space<vmem>>, vector<1x128x64xf32>
    %263 = vector.shape_cast %262 : vector<1x128x64xf32> to vector<128x64xf32>
    %cst_102 = arith.constant dense<0.000000e+00> : vector<16x64xf32>
    %264 = tpu.matmul %261, %263, %cst_102 {dimension_numbers = #tpu.dot_dimension_numbers<[1], [0], [0], [1], [0, 0, 1, 1], [], []>} : vector<16x128xf32>, vector<128x64xf32>, vector<16x64xf32> -> vector<16x64xf32>
    %265 = arith.addf %235, %264 : vector<16x64xf32>
    %266 = vector.extract_strided_slice %265 {offsets = [7, 0], sizes = [1, 64], strides = [1, 1]} : vector<16x64xf32> to vector<1x64xf32>
    %267 = vector.extract_strided_slice %265 {offsets = [15, 0], sizes = [1, 64], strides = [1, 1]} : vector<16x64xf32> to vector<1x64xf32>
    %268 = tpu.concatenate %266, %267 in 0 : vector<1x64xf32>, vector<1x64xf32> -> vector<2x64xf32>
    %c0_103 = arith.constant 0 : index
    %c0_104 = arith.constant 0 : index
    %269 = vector.load %arg11[%c0_103, %c0_104] : memref<1x64xf32, #tpu.memory_space<vmem>>, vector<1x64xf32>
    %270 = arith.mulf %268, %268 : vector<2x64xf32>
    %cst_105 = arith.constant dense<0.000000e+00> : vector<2xf32>
    %271 = vector.multi_reduction <add>, %270, %cst_105 [1] : vector<2x64xf32> to vector<2xf32>
    %272 = vector.shape_cast %271 : vector<2xf32> to vector<2x1xf32>
    %cst_106 = arith.constant 6.400000e+01 : f32
    %273 = vector.broadcast %cst_106 : f32 to vector<2x1xf32>
    %274 = arith.divf %272, %273 : vector<2x1xf32>
    %cst_107 = arith.constant 9.99999974E-6 : f32
    %275 = vector.broadcast %cst_107 : f32 to vector<2x1xf32>
    %276 = arith.addf %274, %275 : vector<2x1xf32>
    %277 = math.rsqrt %276 : vector<2x1xf32>
    %278 = vector.broadcast %277 : vector<2x1xf32> to vector<2x64xf32>
    %279 = arith.mulf %268, %278 : vector<2x64xf32>
    %280 = vector.broadcast %269 : vector<1x64xf32> to vector<2x64xf32>
    %281 = arith.mulf %279, %280 : vector<2x64xf32>
    %c0_108 = arith.constant 0 : index
    %c0_109 = arith.constant 0 : index
    %282 = vector.load %arg12[%c0_108, %c0_109] : memref<64x256xf32, #tpu.memory_space<vmem>>, vector<64x256xf32>
    %cst_110 = arith.constant dense<0.000000e+00> : vector<2x256xf32>
    %283 = tpu.matmul %281, %282, %cst_110 {dimension_numbers = #tpu.dot_dimension_numbers<[1], [0], [0], [1], [0, 0, 1, 1], [], []>} : vector<2x64xf32>, vector<64x256xf32>, vector<2x256xf32> -> vector<2x256xf32>
    %c0_111 = arith.constant 0 : index
    %c0_112 = arith.constant 0 : index
    %284 = vector.load %arg13[%c0_111, %c0_112] : memref<2x256xf32, #tpu.memory_space<vmem>>, vector<2x256xf32>
    tpu.vector_store %arg13[%c0_111, %c0_112], %283 {strides = array<i32>} : memref<2x256xf32, #tpu.memory_space<vmem>>, vector<2x256xf32>,
    return
  }
  func.func @transform_0(%arg0: i32) -> (i32, i32) {
    %c0_i32 = arith.constant 0 : i32
    %c0_i32_0 = arith.constant 0 : i32
    %c0_i32_1 = arith.constant 0 : i32
    return %c0_i32, %c0_i32_0 : i32, i32
  }
  func.func @transform_1(%arg0: i32) -> (i32, i32) {
    %c0_i32 = arith.constant 0 : i32
    %c0_i32_0 = arith.constant 0 : i32
    %c0_i32_1 = arith.constant 0 : i32
    return %c0_i32, %c0_i32_0 : i32, i32
  }
  func.func @transform_2(%arg0: i32) -> (i32, i32) {
    %c0_i32 = arith.constant 0 : i32
    %c0_i32_0 = arith.constant 0 : i32
    %c0_i32_1 = arith.constant 0 : i32
    return %c0_i32, %c0_i32_0 : i32, i32
  }
  func.func @transform_3(%arg0: i32) -> (i32, i32) {
    %c0_i32 = arith.constant 0 : i32
    %c0_i32_0 = arith.constant 0 : i32
    %c0_i32_1 = arith.constant 0 : i32
    return %c0_i32, %c0_i32_0 : i32, i32
  }
  func.func @transform_4(%arg0: i32) -> (i32, i32, i32) {
    %c0_i32 = arith.constant 0 : i32
    %c0_i32_0 = arith.constant 0 : i32
    %c0_i32_1 = arith.constant 0 : i32
    %c0_i32_2 = arith.constant 0 : i32
    return %c0_i32, %c0_i32_0, %c0_i32_1 : i32, i32, i32
  }
  func.func @transform_5(%arg0: i32) -> (i32, i32, i32) {
    %c0_i32 = arith.constant 0 : i32
    %c0_i32_0 = arith.constant 0 : i32
    %c0_i32_1 = arith.constant 0 : i32
    %c0_i32_2 = arith.constant 0 : i32
    return %c0_i32, %c0_i32_0, %c0_i32_1 : i32, i32, i32
  }
  func.func @transform_6(%arg0: i32) -> (i32, i32, i32) {
    %c0_i32 = arith.constant 0 : i32
    %c0_i32_0 = arith.constant 0 : i32
    %c0_i32_1 = arith.constant 0 : i32
    %c0_i32_2 = arith.constant 0 : i32
    return %c0_i32, %c0_i32_0, %c0_i32_1 : i32, i32, i32
  }
  func.func @transform_7(%arg0: i32) -> (i32, i32, i32) {
    %c0_i32 = arith.constant 0 : i32
    %c0_i32_0 = arith.constant 0 : i32
    %c0_i32_1 = arith.constant 0 : i32
    %c0_i32_2 = arith.constant 0 : i32
    return %c0_i32, %c0_i32_0, %c0_i32_1 : i32, i32, i32
  }
  func.func @transform_8(%arg0: i32) -> (i32, i32, i32) {
    %c0_i32 = arith.constant 0 : i32
    %c0_i32_0 = arith.constant 0 : i32
    %c0_i32_1 = arith.constant 0 : i32
    %c0_i32_2 = arith.constant 0 : i32
    return %c0_i32, %c0_i32_0, %c0_i32_1 : i32, i32, i32
  }
  func.func @transform_9(%arg0: i32) -> (i32, i32, i32) {
    %c0_i32 = arith.constant 0 : i32
    %c0_i32_0 = arith.constant 0 : i32
    %c0_i32_1 = arith.constant 0 : i32
    %c0_i32_2 = arith.constant 0 : i32
    return %c0_i32, %c0_i32_0, %c0_i32_1 : i32, i32, i32
  }
  func.func @transform_10(%arg0: i32) -> (i32, i32) {
    %c0_i32 = arith.constant 0 : i32
    %c0_i32_0 = arith.constant 0 : i32
    %c0_i32_1 = arith.constant 0 : i32
    return %c0_i32, %c0_i32_0 : i32, i32
  }
  func.func @transform_11(%arg0: i32) -> (i32, i32) {
    %c0_i32 = arith.constant 0 : i32
    %c0_i32_0 = arith.constant 0 : i32
    %c0_i32_1 = arith.constant 0 : i32
    return %c0_i32, %c0_i32_0 : i32, i32
  }
  func.func @transform_12(%arg0: i32) -> (i32, i32) {
    %c0_i32 = arith.constant 0 : i32
    %c0_i32_0 = arith.constant 0 : i32
    %c0_i32_1 = arith.constant 0 : i32
    return %c0_i32, %c0_i32_0 : i32, i32
  }
}

</mosaic_0001>

<bundles_post_ra>
// kernel: transformer_forward_pallas.1
= control target key start
LH: loop header
LB: loop body
LE: loop exit
PB: predicated region body
PF: predicated region fallthrough
CT: control target
= control target key end

     0   :  { %17 = vsyncpa [#allocation3], 0  ;;  %s4030_s21 = smov [#allocation2]   ;;  %s4910_s0 = inlined_call_operand.vmem [shape: f32[16,64], index: 0, kind: input, shape index: {}]   ;;  %s4911_s1 = inlined_call_operand.vmem [shape: f32[16,64], index: 1, kind: input, shape index: {}]   ;;  %s4912_s2 = inlined_call_operand.vmem [shape: f32[16,64], index: 2, kind: input, shape index: {}]   ;;  %s4913_s3 = inlined_call_operand.vmem [shape: f32[16,16], index: 3, kind: input, shape index: {}]   ;;  %s4914_s4 = inlined_call_operand.vmem [shape: f32[2,1,64], index: 4, kind: input, shape index: {}]   ;;  %s4915_s5 = inlined_call_operand.vmem [shape: f32[2,64,320], index: 5, kind: input, shape index: {}]   ;;  %s4916_s6 = inlined_call_operand.vmem [shape: f32[2,64,64], index: 6, kind: input, shape index: {}]   ;;  %s4917_s7 = inlined_call_operand.vmem [shape: f32[2,1,64], index: 7, kind: input, shape index: {}]   ;;  %s4918_s8 = inlined_call_operand.vmem [shape: f32[2,64,256], index: 8, kind: input, shape index: {}]   ;;  %s4919_s9 = inlined_call_operand.vmem [shape: f32[2,128,64], index: 9, kind: input, shape index: {}]   ;;  %s4920_s10 = inlined_call_operand.vmem [shape: f32[1,64], index: 10, kind: input, shape index: {}]   ;;  %s4921_s11 = inlined_call_operand.hbm [shape: f32[64,256], index: 11, kind: input, shape index: {}]   ;;  %s4922_s12 = inlined_call_operand.vmem [shape: f32[2,256], index: 12, kind: output, shape index: {}]  }
   0x1   :  { %s45_s22 = sshll.u32 %s4030_s21, 4  ;;  %s4006_s25 = scalar_lea.hbm %s4921_s11, 2048  ;;  %s46_s22 = int_to_ptr.vmem [resolvable:$true] %s45_s22 }
   0x2   :  { %p4007_p0 = scmp.ne.s32.totalorder %s4921_s11, %s4006_s25  ;;  %p4010_p1 = scmp.lt.u32.totalorder %s4006_s25, %s4921_s11 }
   0x4   :  { %p4012_p2 = pnand %p4010_p1, %p4007_p0 }
   0x6   :  { %4015 = shalt.err (!%p4012_p2)
}
   0x7   :  { %s4016_s30 = scalar_lea.vmem %s46_s22, 2048  ;;  %p4021_p4 = scmp.lt.s32.totalorder %s46_s22, %s46_s22 }
   0x8   :  { %p4017_p3 = scmp.ne.s32.totalorder %s46_s22, %s4016_s30  ;;  %p4022_p5 = scmp.lt.s32.totalorder %s4016_s30, %s4016_s30 }
   0xa   :  { %p4023_p6 = por %p4022_p5, %p4021_p4 }
   0xc   :  { %p4024_p7 = pnand %p4023_p6, %p4017_p3 }
   0xe   :  { %4027 = shalt.err (!%p4024_p7)
}
   0xf   :  { %s4031_s13 = smov 256   ;;  %s4032_s14 = smov 16  }
  0x10   :  { %51 = dma.hbm_to_vmem [thread:$0]  %s4921_s11, 2048, %s46_s22, [#allocation3], %s4031_s13, %s4031_s13, %s4032_s14  }
  0x11   :  { %4028 = dma.done.wait [#allocation3], 2048  }
  0x12   :  { %4029 = vsyncadd [#allocation3], 4294965248  ;;  %v4121_v0 = vld [vmem:[%s4910_s0] sm:$0xff]  ;;  %vm66_vm0 = vcmask 523264   ;;  %v4126_v1 = vld [vmem:[%s4910_s0 + $0x8] sm:$0xff]  ;;  %v4033_v28 = vmov 0.0  }
  0x13   :  { %v64_v2 = vmul.f32 %v4121_v0, %v4121_v0  ;;  %v65_v3 = vmul.f32 %v4126_v1, %v4126_v1  ;;  %v91_v6 = vld [vmem:[%s4915_s5 + $0x8] sm:$0xff]  ;;  %v94_v7 = vld [vmem:[%s4915_s5 + $0x20] sm:$0xff]  ;;  %v93_v10 = vld [vmem:[%s4915_s5 + $0x18] sm:$0xff]  ;;  %184 = vmatprep.mubr.f32.mxu0 %v4033_v28  ;;  %s4034_s13 = smov 64   ;;  %vm308_vm1 = vcmask 130048   ;;  %s4035_s24 = smov 96  }
  0x14   :  { %v3547_v8 = vpack.c.bf16 %v94_v7, %v91_v6  ;;  %v90_v9 = vld [vmem:[%s4915_s5] sm:$0xff]  ;;  %v97_v12 = vld [vmem:[%s4915_s5 + $0x38] sm:$0xff]  ;;  %v100_v13 = vld [vmem:[%s4915_s5 + $0x50] sm:$0xff]  ;;  %s4036_s25 = smov 112   ;;  %s4037_s26 = smov 80   ;;  %vm1143_vm3 = vcmask 261120  }
  0x15   :  { %v67_v4 = vsel %vm66_vm0, %v64_v2, 0.0  ;;  %v70_v5 = vsel %vm66_vm0, %v65_v3, 0.0  ;;  %v3549_v11 = vpack.c.bf16 %v93_v10, %v90_v9  ;;  %v92_v14 = vld [vmem:[%s4915_s5 + $0x10] sm:$0xff]  ;;  %v3551_v15 = vpack.c.bf16 %v100_v13, %v97_v12  ;;  %v95_v16 = vld [vmem:[%s4915_s5 + $0x28] sm:$0xff]  ;;  %v106_v22 = vld [vmem:[%s4915_s5 + $0x80] sm:$0xff]  ;;  %s4038_s27 = smov 32  }
  0x16   :  { %68 = vadd.xlane.f32.xlu0 %v67_v4  ;;  %3548 = vmatprep.subr.bf16.mxu0 %v3547_v8  ;;  %v96_v17 = vld [vmem:[%s4915_s5 + $0x30] sm:$0xff]  ;;  %v99_v18 = vld [vmem:[%s4915_s5 + $0x48] sm:$0xff]  ;;  %v3563_v19 = vpack.c.bf16 %v95_v16, %v92_v14  ;;  %v98_v23 = vld [vmem:[%s4915_s5 + $0x40] sm:$0xff]  ;;  %s4039_s28 = smov 48   ;;  %vm1146_vm4 = vcmask 392192   ;;  %vm2882_vm5 = vcmask 1040384  }
  0x17   :  { %3550 = vmatpush1.bf16.msra.mxu0 %v3549_v11  ;;  %v3553_v20 = vpack.c.bf16 %v99_v18, %v96_v17  ;;  %v103_v21 = vld [vmem:[%s4915_s5 + $0x68] sm:$0xff]  ;;  %v101_v25 = vld [vmem:[%s4915_s5 + $0x58] sm:$0xff]  ;;  %v102_v26 = vld [vmem:[%s4915_s5 + $0x60] sm:$0xff]  ;;  %vm2886_vm6 = vcmask 517120  }
  0x18   :  { %3552 = vmatprep.subr.bf16.mxu0 %v3551_v15  ;;  %3564 = vmatprep.subr.bf16.mxu1 %v3563_v19  ;;  %v3555_v24 = vpack.c.bf16 %v106_v22, %v103_v21  ;;  %v105_v27 = vld [vmem:[%s4915_s5 + $0x78] sm:$0xff]  ;;  %v3567_v29 = vpack.c.bf16 %v101_v25, %v98_v23  ;;  %v112_v32 = vld [vmem:[%s4915_s5 + $0xb0] sm:$0xff]  ;;  %v107_v35 = vld [vmem:[%s4915_s5 + $0x88] sm:$0xff] }
  0x19   :  { %3566 = vmatpush3.bf16.msra.mxu1 %v3563_v19  ;;  %v3557_v30 = vpack.c.bf16 %v105_v27, %v102_v26  ;;  %v109_v31 = vld [vmem:[%s4915_s5 + $0x98] sm:$0xff]  ;;  %v104_v33 = vld [vmem:[%s4915_s5 + $0x70] sm:$0xff]  ;;  %v111_v37 = vld [vmem:[%s4915_s5 + $0xa8] sm:$0xff] }
  0x1a   :  { %71 = vadd.xlane.f32.xlu0 %v70_v5  ;;  %v3559_v34 = vpack.c.bf16 %v112_v32, %v109_v31  ;;  %v108_v36 = vld [vmem:[%s4915_s5 + $0x90] sm:$0xff]  ;;  %3568 = vmatprep.subr.bf16.mxu1 %v3567_v29  ;;  %v3571_v38 = vpack.c.bf16 %v107_v35, %v104_v33  ;;  %v110_v40 = vld [vmem:[%s4915_s5 + $0xa0] sm:$0xff]  ;;  %v113_v41 = vld [vmem:[%s4915_s5 + $0xb8] sm:$0xff] }
  0x1b   :  { %3554 = vmatpush1.bf16.msra.mxu0 %v3553_v20  ;;  %v3561_v39 = vpack.c.bf16 %v111_v37, %v108_v36  ;;  %v3575_v42 = vpack.c.bf16 %v113_v41, %v110_v40  ;;  %v57_v43 = vld [vmem:[%s4912_s2] sm:$0xff]  ;;  %v58_v44 = vld [vmem:[%s4912_s2 + $0x8] sm:$0xff]  ;;  %vm4254_vm2 = vmpackc.low %vm308_vm1, %vm308_vm1 }
  0x1c   :  { %3556 = vmatprep.subr.bf16.mxu0 %v3555_v24  ;;  %276 = vrot.lane.b32.xlu1 %v57_v43, %s4034_s13  ;;  %v3008_v52 = vld [vmem:[%s4914_s4] ss:$0 sm:$0xff]  ;;  %v4247_v11 = vld [vmem:[%s4911_s1 + $0x8] sm:$0xff] }
  0x1d   :  { %3570 = vmatpush3.bf16.msra.mxu1 %v3567_v29  ;;  %v4242_v10 = vld [vmem:[%s4911_s1] sm:$0xff]  ;;  %v4276_v29 = vld [vmem:[%s4913_s3 + $0x8] sm:$0xff] }
  0x1e   :  { %3572 = vmatprep.subr.bf16.mxu1 %v3571_v38  ;;  %v4281_v32 = vld [vmem:[%s4913_s3] sm:$0xff] }
  0x1f   :  { %3558 = vmatpush1.bf16.msra.mxu0 %v3557_v30 }
  0x20   :  { %3560 = vmatprep.subr.bf16.mxu0 %v3559_v34  ;;  %278 = vrot.lane.b32.xlu1 %v58_v44, %s4034_s13 }
  0x21   :  { %3574 = vmatpush3.bf16.msra.mxu1 %v3571_v38 }
  0x22   :  { %3576 = vmatprep.subr.bf16.mxu1 %v3575_v42 }
  0x23   :  { %3562 = vmatpush1.bf16.msra.mxu0 %v3561_v39 }
  0x25   :  { %3578 = vmatpush3.bf16.msra.mxu1 %v3575_v42 }
  0x8e   :  { %v4225_v58 = vpop.permute.xlu1 %276 }
  0x92   :  { %v4228_v62 = vpop.permute.xlu1 %278 }
  0xa3   :  { %v69_v45 = vpop.xlane.xlu0 %68 }
  0xa4   :  { %v74_v46 = vmul.f32 0.015625, %v69_v45 }
  0xa6   :  { %v76_v47 = vadd.f32 1e-05, %v74_v46 }
  0xa7   :  { %v72_v48 = vpop.xlane.xlu0 %71 }
  0xa8   :  { %3905 = vrsqrt.f32 %v76_v47  ;;  %v75_v49 = vmul.f32 0.015625, %v72_v48 }
  0xaa   :  { %v77_v50 = vadd.f32 1e-05, %v75_v49 }
  0xac   :  { %3907 = vrsqrt.f32 %v77_v50 }
  0xb2   :  { %v3906_v51 = vpop.eup %3905 }
  0xb3   :  { %v80_v53 = vmul.f32 %v3906_v51, %v4121_v0 }
  0xb5   :  { %v88_v54 = vmul.f32 %v3008_v52, %v80_v53 }
  0xb6   :  { %v3908_v55 = vpop.eup %3907 }
  0xb7   :  { %3009 = vmatmul.mubr.msk.f32.vlgmr.msra.gmra.mrb[0].mxu0 %vm66_vm0, %v88_v54  ;;  %3305 = vmatprep.mubr.msk.f32.mxu1 %vm66_vm0, %v88_v54  ;;  %v81_v56 = vmul.f32 %v3908_v55, %v4126_v1 }
  0xb8   :  { %190 = vmatprep.mubr.f32.mxu0 %v4033_v28 }
  0xb9   :  { %v89_v57 = vmul.f32 %v3008_v52, %v81_v56 }
  0xbb   :  { %3010 = vmatmul.mubr.msk.f32.gmra.mrb[2].mxu0 %vm66_vm0, %v89_v57  ;;  %3306 = vmatmul.mubr.msk.f32.vlgmr.msra.gmra.mrb[0].mxu1 %vm66_vm0, %v89_v57 }
 0x18a   :  { %v186_v59 = vpop.f32.mrb[0].mxu0 }
 0x18b   :  { %v188_v60 = vpop.f32.mrb[1].mxu0  ;;  %v282_v8 = vmul.f32 %v4225_v58, %v186_v59  ;;  %v272_v18 = vmul.f32 %v186_v59, %v4242_v10 }
 0x18c   :  { %v296_v61 = vmul.f32 %v4225_v58, %v188_v60  ;;  %v294_v13 = vmul.f32 %v188_v60, %v4242_v10 }
 0x18e   :  { %v192_v63 = vpop.f32.mrb[2].mxu0  ;;  %v3307_v2 = vpop.f32.mrb[0].mxu1  ;;  %300 = vrot.lane.b32.xlu0 %v296_v61, %s4034_s13 }
 0x18f   :  { %v194_v3 = vpop.f32.mrb[3].mxu0  ;;  %v263_v4 = vpop.f32.mrb[1].mxu1  ;;  %v283_v9 = vmul.f32 %v4228_v62, %v192_v63  ;;  %v273_v25 = vmul.f32 %v192_v63, %v4247_v11 }
 0x190   :  { %v297_v5 = vmul.f32 %v4228_v62, %v194_v3  ;;  %v3585_v6 = vpack.c.bf16 %v3307_v2, %v263_v4  ;;  %v4232_v7 = vpack.i.bf16 %v3307_v2, %v263_v4  ;;  %v295_v14 = vmul.f32 %v194_v3, %v4247_v11 }
 0x192   :  { %3586 = vmatprep.subr.bf16.mxu1 %v3585_v6  ;;  %302 = vrot.lane.b32.xlu1 %v297_v5, %s4034_s13 }
 0x193   :  { %3588 = vmatpush3.bf16.msra.mxu1 %v3585_v6 }
 0x196   :  { %286 = vrot.lane.b32.xlu1 %v282_v8, %s4034_s13 }
 0x19a   :  { %288 = vrot.lane.b32.xlu1 %v283_v9, %s4034_s13 }
 0x200   :  { %v301_v12 = vpop.permute.xlu0 %300 }
 0x201   :  { %v306_v16 = vadd.f32 %v301_v12, %v294_v13 }
 0x204   :  { %v303_v15 = vpop.permute.xlu1 %302 }
 0x205   :  { %v307_v17 = vadd.f32 %v303_v15, %v295_v14 }
 0x207   :  { %v3579_v20 = vpack.c.bf16 %v307_v17, %v306_v16  ;;  %v4258_v21 = vpack.i.bf16 %v307_v17, %v306_v16 }
 0x208   :  { %v287_v22 = vpop.permute.xlu1 %286 }
 0x209   :  { %v4260_v23 = vadd.f32 %v287_v22, %v272_v18  ;;  %3581 = vmatprep.subr.msk.bf16.mxu0 %vm4254_vm2, %v3579_v20 }
 0x20a   :  { %3584 = vmatpush3.bf16.xpose.msk.msra.mxu0 %vm4254_vm2, %v3579_v20 }
 0x20b   :  { %3312 = vmatprep.mubr.msk.f32.mxu0 %vm308_vm1, %v4260_v23 }
 0x20c   :  { %v289_v24 = vpop.permute.xlu1 %288 }
 0x20d   :  { %v4269_v26 = vadd.f32 %v289_v24, %v273_v25 }
 0x211   :  { %3313 = vmatmul.mubr.msk.f32.vlgmr.msra.gmra.mrb[4].mxu0 %vm308_vm1, %v4269_v26 }
 0x2e4   :  { %v3314_v27 = vpop.f32.mrb[4].mxu0 }
 0x2e5   :  { %v397_v30 = vmul.f32 0.25, %v3314_v27  ;;  %v387_v31 = vpop.f32.mrb[5].mxu0 }
 0x2e6   :  { %v396_v33 = vmul.f32 0.25, %v387_v31 }
 0x2e7   :  { %v399_v34 = vadd.f32 %v397_v30, %v4276_v29 }
 0x2e8   :  { %v398_v35 = vadd.f32 %v396_v33, %v4281_v32 }
 0x2e9   :  { %v403_v36 = vsel %vm308_vm1, %v399_v34, -inf }
 0x2ea   :  { %404 = vmax.xlane.f32.xlu0 %v403_v36  ;;  %v400_v37 = vsel %vm308_vm1, %v398_v35, -inf }
 0x2eb   :  { %401 = vmax.xlane.f32.xlu1 %v400_v37 }
 0x2fc   :  { %3851 = vrot.lane.b32.xlu1 %v4258_v21, %s4035_s24 }
 0x300   :  { %3846 = vrot.lane.b32.xlu0 %v4258_v21, %s4036_s25 }
 0x304   :  { %505 = vrot.lane.b32.xlu0 %v4269_v26, %s4036_s25 }
 0x308   :  { %711 = vrot.lane.b32.xlu0 %v4269_v26, %s4035_s24 }
 0x377   :  { %v405_v38 = vpop.xlane.xlu0 %404 }
 0x378   :  { %v407_v39 = vsub.f32 %v399_v34, %v405_v38  ;;  %v402_v40 = vpop.xlane.xlu1 %401 }
 0x379   :  { %v406_v41 = vsub.f32 %v398_v35, %v402_v40 }
 0x37a   :  { %v410_v42 = vmul.f32 1.442695, %v407_v39 }
 0x37b   :  { %v408_v43 = vmul.f32 1.442695, %v406_v41  ;;  %v3847_v44 = vpop.permute.xlu0 %3846 }
 0x37c   :  { %3909 = vpow2.f32 %v410_v42  ;;  %v3849_v45 = vunpack.i.h.bf16 %v3847_v44  ;;  %v3848_v46 = vunpack.i.l.bf16 %v3847_v44  ;;  %v3852_v52 = vpop.permute.xlu1 %3851 }
 0x37d   :  { %3911 = vpow2.f32 %v408_v43  ;;  %v3854_v57 = vunpack.i.h.bf16 %v3852_v52  ;;  %v3853_v59 = vunpack.i.l.bf16 %v3852_v52 }
 0x37e   :  { %v3589_v47 = vpack.c.bf16 %v3849_v45, %v3848_v46 }
 0x37f   :  { %v3599_v63 = vpack.c.bf16 %v3854_v57, %v3853_v59  ;;  %v506_v3 = vpop.permute.xlu0 %505 }
 0x380   :  { %3591 = vmatprep.subr.msk.bf16.mxu1 %vm4254_vm2, %v3589_v47 }
 0x383   :  { %v712_v5 = vpop.permute.xlu0 %711 }
 0x386   :  { %v3910_v48 = vpop.eup %3909 }
 0x387   :  { %v415_v49 = vsel %vm308_vm1, %v3910_v48, 0.0  ;;  %v3912_v50 = vpop.eup %3911 }
 0x388   :  { %416 = vadd.xlane.f32.xlu1 %v415_v49  ;;  %v412_v51 = vsel %vm308_vm1, %v3912_v50, 0.0 }
 0x38c   :  { %413 = vadd.xlane.f32.xlu1 %v412_v51 }
 0x39d   :  { %503 = vrot.lane.b32.xlu1 %v4260_v23, %s4036_s25 }
 0x3a1   :  { %709 = vrot.lane.b32.xlu1 %v4260_v23, %s4035_s24 }
 0x415   :  { %v417_v53 = vpop.xlane.xlu1 %416 }
 0x416   :  { %3913 = vrcp.f32 %v417_v53 }
 0x419   :  { %v414_v54 = vpop.xlane.xlu1 %413 }
 0x41a   :  { %3915 = vrcp.f32 %v414_v54 }
 0x41d   :  { %v504_v2 = vpop.permute.xlu1 %503 }
 0x420   :  { %v3914_v55 = vpop.eup %3913 }
 0x421   :  { %v421_v61 = vmul.f32 %v3914_v55, %v3910_v48  ;;  %v710_v4 = vpop.permute.xlu1 %709 }
 0x424   :  { %v3916_v56 = vpop.eup %3915 }
 0x425   :  { %v419_v60 = vmul.f32 %v3916_v56, %v3912_v50 }
 0x427   :  { %3319 = vmatprep.mubr.msk.f32.mxu1 %vm308_vm1, %v419_v60 }
 0x428   :  { %3320 = vmatmul.mubr.msk.f32.vlgmr.msra.gmra.mrb[2].mxu1 %vm308_vm1, %v421_v61 }
 0x429   :  { %3594 = vmatpush3.bf16.xpose.msk.msra.mxu1 %vm4254_vm2, %v3589_v47  ;;  %3326 = vmatprep.mubr.msk.f32.mxu1 %vm308_vm1, %v504_v2 }
 0x42a   :  { %3601 = vmatprep.subr.msk.bf16.mxu1 %vm4254_vm2, %v3599_v63 }
 0x430   :  { %3327 = vmatmul.mubr.msk.f32.vlgmr.msra.gmra.mrb[4].mxu1 %vm308_vm1, %v506_v3 }
 0x431   :  { %3604 = vmatpush3.bf16.xpose.msk.msra.mxu1 %vm4254_vm2, %v3599_v63  ;;  %3340 = vmatprep.mubr.msk.f32.mxu1 %vm308_vm1, %v710_v4 }
 0x438   :  { %3341 = vmatmul.mubr.msk.f32.vlgmr.msra.gmra.mrb[6].mxu1 %vm308_vm1, %v712_v5 }
 0x4fb   :  { %v4315_v6 = vpop.f32.mrb[2].mxu1 }
 0x4fc   :  { %v4317_v8 = vpop.f32.mrb[3].mxu1 }
 0x503   :  { %v3328_v9 = vpop.f32.mrb[4].mxu1 }
 0x504   :  { %v585_v12 = vpop.f32.mrb[5].mxu1  ;;  %v595_v39 = vmul.f32 0.25, %v3328_v9 }
 0x505   :  { %v594_v38 = vmul.f32 0.25, %v585_v12 }
 0x506   :  { %v597_v41 = vadd.f32 %v595_v39, %v4276_v29 }
 0x507   :  { %v596_v40 = vadd.f32 %v594_v38, %v4281_v32 }
 0x509   :  { %v598_v42 = vsel %vm308_vm1, %v596_v40, -inf }
 0x50b   :  { %v3342_v13 = vpop.f32.mrb[6].mxu1 }
 0x50c   :  { %v801_v14 = vmul.f32 0.25, %v3342_v13  ;;  %v791_v15 = vpop.f32.mrb[7].mxu1 }
 0x50d   :  { %v800_v16 = vmul.f32 0.25, %v791_v15 }
 0x50e   :  { %v803_v17 = vadd.f32 %v801_v14, %v4276_v29 }
 0x50f   :  { %v802_v18 = vadd.f32 %v800_v16, %v4281_v32 }
 0x510   :  { %v807_v20 = vsel %vm308_vm1, %v803_v17, -inf }
 0x511   :  { %808 = vmax.xlane.f32.xlu0 %v807_v20  ;;  %v804_v22 = vsel %vm308_vm1, %v802_v18, -inf }
 0x512   :  { %805 = vmax.xlane.f32.xlu1 %v804_v22 }
 0x59e   :  { %v809_v24 = vpop.xlane.xlu0 %808 }
 0x59f   :  { %v811_v25 = vsub.f32 %v803_v17, %v809_v24  ;;  %v806_v27 = vpop.xlane.xlu1 %805 }
 0x5a0   :  { %v810_v30 = vsub.f32 %v802_v18, %v806_v27 }
 0x5a1   :  { %v814_v31 = vmul.f32 1.442695, %v811_v25 }
 0x5a2   :  { %v812_v33 = vmul.f32 1.442695, %v810_v30 }
 0x5a3   :  { %3917 = vpow2.f32 %v814_v31 }
 0x5a4   :  { %3919 = vpow2.f32 %v812_v33 }
 0x5ad   :  { %v3918_v34 = vpop.eup %3917 }
 0x5ae   :  { %v3920_v35 = vpop.eup %3919  ;;  %v819_v36 = vsel %vm308_vm1, %v3918_v34, 0.0 }
 0x5af   :  { %820 = vadd.xlane.f32.xlu1 %v819_v36  ;;  %v816_v37 = vsel %vm308_vm1, %v3920_v35, 0.0 }
 0x5b0   :  { %817 = vadd.xlane.f32.xlu0 %v816_v37 }
 0x5c0   :  { %3861 = vrot.lane.b32.xlu1 %v4258_v21, %s4037_s26  ;;  %v601_v21 = vsel %vm308_vm1, %v597_v41, -inf }
 0x5c4   :  { %913 = vrot.lane.b32.xlu1 %v4260_v23, %s4037_s26 }
 0x5c6   :  { %3856 = vrot.lane.b32.xlu0 %v4232_v7, %s4035_s24 }
 0x5ca   :  { %915 = vrot.lane.b32.xlu0 %v4269_v26, %s4037_s26 }
 0x5e8   :  { %599 = vmax.xlane.f32.xlu1 %v598_v42 }
 0x5e9   :  { %602 = vmax.xlane.f32.xlu0 %v601_v21 }
 0x63c   :  { %v821_v43 = vpop.xlane.xlu1 %820 }
 0x63d   :  { %3921 = vrcp.f32 %v821_v43  ;;  %v818_v23 = vpop.xlane.xlu0 %817 }
 0x63e   :  { %3923 = vrcp.f32 %v818_v23 }
 0x640   :  { %v3862_v44 = vpop.permute.xlu1 %3861 }
 0x641   :  { %v3857_v45 = vpop.permute.xlu0 %3856  ;;  %v3864_v46 = vunpack.i.h.bf16 %v3862_v44  ;;  %v3863_v26 = vunpack.i.l.bf16 %v3862_v44 }
 0x642   :  { %v3859_v47 = vunpack.i.h.bf16 %v3857_v45  ;;  %v3858_v48 = vunpack.i.l.bf16 %v3857_v45 }
 0x643   :  { %v3609_v50 = vpack.c.bf16 %v3864_v46, %v3863_v26 }
 0x644   :  { %v3605_v49 = vpack.c.bf16 %v3859_v47, %v3858_v48  ;;  %v914_v55 = vpop.permute.xlu1 %913 }
 0x645   :  { %v916_v56 = vpop.permute.xlu0 %915 }
 0x646   :  { %3606 = vmatprep.subr.bf16.mxu1 %v3605_v49 }
 0x647   :  { %v3922_v51 = vpop.eup %3921  ;;  %3608 = vmatpush3.bf16.msra.mxu1 %v3605_v49 }
 0x648   :  { %v3924_v52 = vpop.eup %3923  ;;  %3611 = vmatprep.subr.msk.bf16.mxu1 %vm4254_vm2, %v3609_v50  ;;  %v825_v54 = vmul.f32 %v3922_v51, %v3918_v34 }
 0x649   :  { %v823_v53 = vmul.f32 %v3924_v52, %v3920_v35 }
 0x64b   :  { %3347 = vmatprep.mubr.msk.f32.mxu1 %vm308_vm1, %v823_v53 }
 0x64c   :  { %3348 = vmatmul.mubr.msk.f32.vlgmr.msra.gmra.mrb[8].mxu1 %vm308_vm1, %v825_v54 }
 0x64d   :  { %3354 = vmatprep.mubr.msk.f32.mxu1 %vm308_vm1, %v914_v55  ;;  %v1149_v55 = vld [vmem:[%s4916_s6] sm:$0xff] }
 0x650   :  { %3614 = vmatpush3.bf16.xpose.msk.msra.mxu1 %vm4254_vm2, %v3609_v50 }
 0x657   :  { %3355 = vmatmul.mubr.msk.f32.vlgmr.msra.gmra.mrb[10].mxu1 %vm308_vm1, %v916_v56  ;;  %v1150_v56 = vld [vmem:[%s4916_s6 + $0x8] sm:$0xff] }
 0x658   :  { %1351 = vmatprep.mubr.f32.mxu1 %v4033_v28 }
 0x675   :  { %v600_v59 = vpop.xlane.xlu1 %599 }
 0x676   :  { %v603_v57 = vpop.xlane.xlu0 %602  ;;  %v604_v61 = vsub.f32 %v596_v40, %v600_v59  ;;  %v3619_v59 = vpack.c.bf16 %v1150_v56, %v1149_v55  ;;  %v1277_v56 = vld [vmem:[%s4918_s8 + $0x60] sm:$0xff] }
 0x677   :  { %v605_v60 = vsub.f32 %v597_v41, %v603_v57  ;;  %v1151_v57 = vld [vmem:[%s4916_s6 + $0x10] sm:$0xff] }
 0x678   :  { %v606_v4 = vmul.f32 1.442695, %v604_v61 }
 0x679   :  { %v608_v3 = vmul.f32 1.442695, %v605_v60  ;;  %v1152_v60 = vld [vmem:[%s4916_s6 + $0x18] sm:$0xff] }
 0x67a   :  { %v3623_v61 = vpack.c.bf16 %v1152_v60, %v1151_v57  ;;  %v1279_v57 = vld [vmem:[%s4918_s8 + $0x70] sm:$0xff] }
 0x67b   :  { %3925 = vpow2.f32 %v608_v3  ;;  %v1153_v3 = vld [vmem:[%s4916_s6 + $0x20] sm:$0xff] }
 0x67c   :  { %3927 = vpow2.f32 %v606_v4  ;;  %v1154_v4 = vld [vmem:[%s4916_s6 + $0x28] sm:$0xff] }
 0x685   :  { %v3926_v17 = vpop.eup %3925 }
 0x686   :  { %v3928_v20 = vpop.eup %3927  ;;  %v613_v22 = vsel %vm308_vm1, %v3926_v17, 0.0 }
 0x687   :  { %v610_v24 = vsel %vm308_vm1, %v3928_v20, 0.0 }
 0x71f   :  { %v4346_v63 = vpop.f32.mrb[8].mxu1 }
 0x720   :  { %v4348_v2 = vpop.f32.mrb[9].mxu1 }
 0x72a   :  { %v3356_v5 = vpop.f32.mrb[10].mxu1 }
 0x72b   :  { %v1005_v9 = vmul.f32 0.25, %v3356_v5  ;;  %v995_v12 = vpop.f32.mrb[11].mxu1  ;;  %v3627_v5 = vpack.c.bf16 %v1154_v4, %v1153_v3 }
 0x72c   :  { %v1004_v13 = vmul.f32 0.25, %v995_v12  ;;  %v1156_v12 = vld [vmem:[%s4916_s6 + $0x38] sm:$0xff] }
 0x72d   :  { %v1007_v14 = vadd.f32 %v1005_v9, %v4276_v29  ;;  %v1155_v9 = vld [vmem:[%s4916_s6 + $0x30] sm:$0xff] }
 0x72e   :  { %v1006_v15 = vadd.f32 %v1004_v13, %v4281_v32  ;;  %v3631_v13 = vpack.c.bf16 %v1156_v12, %v1155_v9 }
 0x72f   :  { %v1011_v16 = vsel %vm308_vm1, %v1007_v14, -inf }
 0x730   :  { %1012 = vmax.xlane.f32.xlu1 %v1011_v16  ;;  %v1008_v18 = vsel %vm308_vm1, %v1006_v15, -inf }
 0x731   :  { %1009 = vmax.xlane.f32.xlu0 %v1008_v18 }
 0x734   :  { %614 = vadd.xlane.f32.xlu1 %v613_v22 }
 0x735   :  { %611 = vadd.xlane.f32.xlu0 %v610_v24 }
 0x7bd   :  { %v1013_v25 = vpop.xlane.xlu1 %1012 }
 0x7be   :  { %v1015_v27 = vsub.f32 %v1007_v14, %v1013_v25  ;;  %v1010_v30 = vpop.xlane.xlu0 %1009 }
 0x7bf   :  { %v1014_v31 = vsub.f32 %v1006_v15, %v1010_v30 }
 0x7c0   :  { %v1018_v33 = vmul.f32 1.442695, %v1015_v27 }
 0x7c1   :  { %v1016_v34 = vmul.f32 1.442695, %v1014_v31  ;;  %v615_v42 = vpop.xlane.xlu1 %614 }
 0x7c2   :  { %3929 = vpow2.f32 %v1018_v33  ;;  %v612_v35 = vpop.xlane.xlu0 %611 }
 0x7c3   :  { %3931 = vpow2.f32 %v1016_v34 }
 0x7c4   :  { %3933 = vrcp.f32 %v612_v35 }
 0x7c5   :  { %3935 = vrcp.f32 %v615_v42  ;;  %v1265_v42 = vld [vmem:[%s4918_s8] sm:$0xff] }
 0x7cc   :  { %v3930_v36 = vpop.eup %3929 }
 0x7cd   :  { %v3932_v37 = vpop.eup %3931  ;;  %v1023_v38 = vsel %vm308_vm1, %v3930_v36, 0.0 }
 0x7ce   :  { %1024 = vadd.xlane.f32.xlu1 %v1023_v38  ;;  %v1020_v39 = vsel %vm308_vm1, %v3932_v37, 0.0  ;;  %v3934_v40 = vpop.eup %3933 }
 0x7cf   :  { %1021 = vadd.xlane.f32.xlu0 %v1020_v39  ;;  %v617_v41 = vmul.f32 %v3934_v40, %v3928_v20  ;;  %v3936_v49 = vpop.eup %3935 }
 0x7d0   :  { %v619_v52 = vmul.f32 %v3936_v49, %v3926_v17  ;;  %v1276_v49 = vld [vmem:[%s4918_s8 + $0x58] sm:$0xff] }
 0x7d1   :  { %3333 = vmatprep.mubr.msk.f32.mxu0 %vm308_vm1, %v617_v41 }
 0x7df   :  { %3871 = vrot.lane.b32.xlu1 %v4232_v7, %s4037_s26 }
 0x7e5   :  { %3866 = vrot.lane.b32.xlu0 %v4232_v7, %s4036_s25 }
 0x85b   :  { %v1025_v21 = vpop.xlane.xlu1 %1024 }
 0x85c   :  { %v1022_v43 = vpop.xlane.xlu0 %1021 }
 0x85d   :  { %3937 = vrcp.f32 %v1022_v43 }
 0x85e   :  { %3939 = vrcp.f32 %v1025_v21  ;;  %v1267_v21 = vld [vmem:[%s4918_s8 + $0x10] sm:$0xff] }
 0x85f   :  { %v3872_v23 = vpop.permute.xlu1 %3871  ;;  %v3637_v43 = vpack.c.bf16 %v1267_v21, %v1265_v42  ;;  %v1394_v21 = vld [vmem:[%s4919_s9 + $0x70] sm:$0xff] }
 0x860   :  { %v3867_v44 = vpop.permute.xlu0 %3866  ;;  %v3874_v45 = vunpack.i.h.bf16 %v3872_v23  ;;  %v3873_v46 = vunpack.i.l.bf16 %v3872_v23  ;;  %v1270_v23 = vld [vmem:[%s4918_s8 + $0x28] sm:$0xff] }
 0x861   :  { %v3869_v26 = vunpack.i.h.bf16 %v3867_v44  ;;  %v3868_v47 = vunpack.i.l.bf16 %v3867_v44  ;;  %v1272_v44 = vld [vmem:[%s4918_s8 + $0x38] sm:$0xff] }
 0x862   :  { %v3615_v50 = vpack.c.bf16 %v3874_v45, %v3873_v46  ;;  %v3639_v45 = vpack.c.bf16 %v1272_v44, %v1270_v23  ;;  %v1269_v46 = vld [vmem:[%s4918_s8 + $0x20] sm:$0xff] }
 0x863   :  { %v3595_v48 = vpack.c.bf16 %v3869_v26, %v3868_v47  ;;  %v1271_v26 = vld [vmem:[%s4918_s8 + $0x30] sm:$0xff] }
 0x864   :  { %v3641_v47 = vpack.c.bf16 %v1271_v26, %v1269_v46 }
 0x865   :  { %3596 = vmatprep.subr.bf16.mxu0 %v3595_v48 }
 0x866   :  { %3598 = vmatpush3.bf16.msra.mxu0 %v3595_v48  ;;  %v1274_v48 = vld [vmem:[%s4918_s8 + $0x48] sm:$0xff] }
 0x867   :  { %v3938_v51 = vpop.eup %3937  ;;  %3616 = vmatprep.subr.bf16.mxu0 %v3615_v50 }
 0x868   :  { %v3940_v7 = vpop.eup %3939  ;;  %v1027_v53 = vmul.f32 %v3938_v51, %v3932_v37  ;;  %v1273_v51 = vld [vmem:[%s4918_s8 + $0x40] sm:$0xff] }
 0x869   :  { %3334 = vmatmul.mubr.msk.f32.vlgmr.msra.gmra.mrb[6].mxu0 %vm308_vm1, %v619_v52  ;;  %v1029_v54 = vmul.f32 %v3940_v7, %v3930_v36  ;;  %v1275_v52 = vld [vmem:[%s4918_s8 + $0x50] sm:$0xff] }
 0x86a   :  { %3618 = vmatpush3.bf16.msra.mxu0 %v3615_v50  ;;  %3361 = vmatprep.mubr.msk.f32.mxu0 %vm308_vm1, %v1027_v53  ;;  %v3643_v50 = vpack.c.bf16 %v1276_v49, %v1274_v48  ;;  %v3645_v7 = vpack.c.bf16 %v1275_v52, %v1273_v51  ;;  %v1278_v53 = vld [vmem:[%s4918_s8 + $0x68] sm:$0xff] }
 0x86b   :  { %3620 = vmatprep.subr.bf16.mxu0 %v3619_v59 }
 0x86d   :  { %3362 = vmatmul.mubr.msk.f32.vlgmr.msra.gmra.mrb[8].mxu0 %vm308_vm1, %v1029_v54  ;;  %v1280_v54 = vld [vmem:[%s4918_s8 + $0x78] sm:$0xff] }
 0x86e   :  { %3622 = vmatpush3.bf16.msra.mxu0 %v3619_v59  ;;  %v3647_v55 = vpack.c.bf16 %v1280_v54, %v1278_v53  ;;  %v3649_v59 = vpack.c.bf16 %v1279_v57, %v1277_v56 }
 0x86f   :  { %3624 = vmatprep.subr.bf16.mxu0 %v3623_v61 }
 0x872   :  { %3626 = vmatpush3.bf16.msra.mxu0 %v3623_v61 }
 0x873   :  { %3628 = vmatprep.subr.bf16.mxu0 %v3627_v5 }
 0x876   :  { %3630 = vmatpush3.bf16.msra.mxu0 %v3627_v5 }
 0x877   :  { %3632 = vmatprep.subr.bf16.mxu0 %v3631_v13 }
 0x87a   :  { %3634 = vmatpush3.bf16.msra.mxu0 %v3631_v13 }
 0x93c   :  { %v3335_v14 = vpop.f32.mrb[6].mxu0 }
 0x93d   :  { %1121 = vrot.lane.b32.xlu0 %v3335_v14, %s4032_s14  ;;  %v700_v15 = vpop.f32.mrb[7].mxu0  ;;  %v3039_v14 = vld [vmem:[%s4917_s7] ss:$0 sm:$0xff] }
 0x93e   :  { %1119 = vrot.lane.b32.xlu1 %v700_v15, %s4032_s14 }
 0x940   :  { %v3363_v16 = vpop.f32.mrb[8].mxu0 }
 0x941   :  { %1129 = vrot.lane.b32.xlu0 %v4346_v63, %s4038_s27  ;;  %v1108_v17 = vpop.f32.mrb[9].mxu0 }
 0x942   :  { %1127 = vrot.lane.b32.xlu1 %v4348_v2, %s4038_s27 }
 0x945   :  { %1137 = vrot.lane.b32.xlu0 %v3363_v16, %s4039_s28 }
 0x946   :  { %1135 = vrot.lane.b32.xlu1 %v1108_v17, %s4039_s28 }
 0x9af   :  { %v1122_v18 = vpop.permute.xlu0 %1121 }
 0x9b0   :  { %v1120_v20 = vpop.permute.xlu1 %1119  ;;  %v1142_v63 = vsel %vm308_vm1, %v4315_v6, %v1122_v18 }
 0x9b1   :  { %v1141_v25 = vsel %vm308_vm1, %v4317_v8, %v1120_v20  ;;  %v1380_v20 = vld [vmem:[%s4919_s9] sm:$0xff] }
 0x9b3   :  { %v1130_v22 = vpop.permute.xlu0 %1129 }
 0x9b4   :  { %v1128_v24 = vpop.permute.xlu1 %1127  ;;  %v1145_v31 = vsel %vm1143_vm3, %v1142_v63, %v1130_v22  ;;  %v1381_v22 = vld [vmem:[%s4919_s9 + $0x8] sm:$0xff] }
 0x9b5   :  { %v1144_v2 = vsel %vm1143_vm3, %v1141_v25, %v1128_v24  ;;  %v3651_v24 = vpack.c.bf16 %v1381_v22, %v1380_v20  ;;  %v1382_v25 = vld [vmem:[%s4919_s9 + $0x10] sm:$0xff] }
 0x9b6   :  { %v3052_v22 = vld [vmem:[%s4915_s5 + $0xf0] sm:$0xff] }
 0x9b7   :  { %v1138_v27 = vpop.permute.xlu0 %1137  ;;  %3652 = vmatprep.subr.bf16.mxu0 %v3651_v24 }
 0x9b8   :  { %v1136_v30 = vpop.permute.xlu1 %1135  ;;  %v1148_v34 = vsel %vm1146_vm4, %v1145_v31, %v1138_v27  ;;  %v1383_v27 = vld [vmem:[%s4919_s9 + $0x18] sm:$0xff] }
 0x9b9   :  { %v1147_v33 = vsel %vm1146_vm4, %v1144_v2, %v1136_v30  ;;  %v3655_v63 = vpack.c.bf16 %v1383_v27, %v1382_v25  ;;  %v1384_v2 = vld [vmem:[%s4919_s9 + $0x20] sm:$0xff]  ;;  %v1385_v30 = vld [vmem:[%s4919_s9 + $0x28] sm:$0xff] }
 0x9ba   :  { %3380 = vmatprep.mubr.msk.f32.mxu0 %vm66_vm0, %v1147_v33  ;;  %v3659_v31 = vpack.c.bf16 %v1385_v30, %v1384_v2  ;;  %v1386_v33 = vld [vmem:[%s4919_s9 + $0x30] sm:$0xff]  ;;  %v3059_v27 = vld [vmem:[%s4915_s5 + $0x128] sm:$0xff]  ;;  %v3058_v30 = vld [vmem:[%s4915_s5 + $0x120] sm:$0xff] }
 0x9bb   :  { %3381 = vmatmul.mubr.msk.f32.vlgmr.msra.gmra.mrb[10].mxu0 %vm66_vm0, %v1148_v34  ;;  %v1387_v34 = vld [vmem:[%s4919_s9 + $0x38] sm:$0xff] }
 0x9bc   :  { %3654 = vmatpush3.bf16.msra.mxu0 %v3651_v24  ;;  %v3055_v24 = vld [vmem:[%s4915_s5 + $0x108] sm:$0xff] }
 0x9bd   :  { %3656 = vmatprep.subr.bf16.mxu0 %v3655_v63  ;;  %v3689_v25 = vpack.c.bf16 %v3055_v24, %v3052_v22 }
 0x9c0   :  { %3658 = vmatpush3.bf16.msra.mxu0 %v3655_v63  ;;  %v3062_v63 = vld [vmem:[%s4915_s5 + $0x140] sm:$0xff] }
 0x9c1   :  { %3660 = vmatprep.subr.bf16.mxu0 %v3659_v31  ;;  %v3691_v2 = vpack.c.bf16 %v3062_v63, %v3059_v27 }
 0x9c4   :  { %3662 = vmatpush3.bf16.msra.mxu0 %v3659_v31  ;;  %v3061_v31 = vld [vmem:[%s4915_s5 + $0x138] sm:$0xff] }
 0xa8e   :  { %v3382_v35 = vpop.f32.mrb[10].mxu0 }
 0xa8f   :  { %v4409_v8 = vadd.f32 %v3382_v35, %v4126_v1  ;;  %v1229_v36 = vpop.f32.mrb[11].mxu0  ;;  %v1266_v1 = vld [vmem:[%s4918_s8 + $0x8] sm:$0xff]  ;;  %v3663_v35 = vpack.c.bf16 %v1387_v34, %v1386_v33  ;;  %v3693_v33 = vpack.c.bf16 %v3061_v31, %v3058_v30  ;;  %v3065_v34 = vld [vmem:[%s4915_s5 + $0x158] sm:$0xff] }
 0xa90   :  { %v4412_v6 = vadd.f32 %v1229_v36, %v4121_v0  ;;  %v1268_v0 = vld [vmem:[%s4918_s8 + $0x18] sm:$0xff]  ;;  %v1388_v36 = vld [vmem:[%s4919_s9 + $0x40] sm:$0xff] }
 0xa91   :  { %v1242_v37 = vmul.f32 %v4409_v8, %v4409_v8  ;;  %v3635_v41 = vpack.c.bf16 %v1268_v0, %v1266_v1  ;;  %3664 = vmatprep.subr.bf16.mxu0 %v3663_v35  ;;  %v1392_v0 = vld [vmem:[%s4919_s9 + $0x60] sm:$0xff] }
 0xa92   :  { %v1241_v38 = vmul.f32 %v4412_v6, %v4412_v6  ;;  %3666 = vmatpush3.bf16.msra.mxu0 %v3663_v35  ;;  %v3068_v35 = vld [vmem:[%s4915_s5 + $0x170] sm:$0xff] }
 0xa93   :  { %v1246_v39 = vsel %vm66_vm0, %v1242_v37, 0.0  ;;  %3636 = vmatprep.subr.bf16.mxu1 %v3635_v41  ;;  %v1389_v37 = vld [vmem:[%s4919_s9 + $0x48] sm:$0xff] }
 0xa94   :  { %1247 = vadd.xlane.f32.xlu0 %v1246_v39  ;;  %v1243_v40 = vsel %vm66_vm0, %v1241_v38, 0.0  ;;  %3638 = vmatpush1.bf16.msra.mxu1 %v3637_v43  ;;  %v3667_v38 = vpack.c.bf16 %v1389_v37, %v1388_v36  ;;  %v1390_v39 = vld [vmem:[%s4919_s9 + $0x50] sm:$0xff]  ;;  %v1393_v41 = vld [vmem:[%s4919_s9 + $0x68] sm:$0xff]  ;;  %v1395_v43 = vld [vmem:[%s4919_s9 + $0x78] sm:$0xff]  ;;  %v3695_v36 = vpack.c.bf16 %v3068_v35, %v3065_v34 }
 0xa95   :  { %1244 = vadd.xlane.f32.xlu1 %v1243_v40  ;;  %3640 = vmatprep.subr.bf16.mxu1 %v3639_v45  ;;  %v1391_v40 = vld [vmem:[%s4919_s9 + $0x58] sm:$0xff]  ;;  %v3675_v42 = vpack.c.bf16 %v1393_v41, %v1392_v0  ;;  %v3679_v23 = vpack.c.bf16 %v1395_v43, %v1394_v21  ;;  %v3064_v37 = vld [vmem:[%s4915_s5 + $0x150] sm:$0xff] }
 0xa96   :  { %3668 = vmatprep.subr.bf16.mxu0 %v3667_v38  ;;  %v3671_v1 = vpack.c.bf16 %v1391_v40, %v1390_v39  ;;  %v3048_v40 = vld [vmem:[%s4915_s5 + $0xd0] sm:$0xff] }
 0xa97   :  { %3670 = vmatpush3.bf16.msra.mxu0 %v3667_v38  ;;  %v3067_v38 = vld [vmem:[%s4915_s5 + $0x168] sm:$0xff] }
 0xa98   :  { %3642 = vmatpush1.bf16.msra.mxu1 %v3641_v47  ;;  %3672 = vmatprep.subr.bf16.mxu0 %v3671_v1  ;;  %v3697_v39 = vpack.c.bf16 %v3067_v38, %v3064_v37 }
 0xa99   :  { %3644 = vmatprep.subr.bf16.mxu1 %v3643_v50 }
 0xa9b   :  { %3674 = vmatpush3.bf16.msra.mxu0 %v3671_v1  ;;  %v3051_v1 = vld [vmem:[%s4915_s5 + $0xe8] sm:$0xff] }
 0xa9c   :  { %3646 = vmatpush1.bf16.msra.mxu1 %v3645_v7  ;;  %3676 = vmatprep.subr.bf16.mxu0 %v3675_v42  ;;  %v3699_v0 = vpack.c.bf16 %v3051_v1, %v3048_v40 }
 0xa9d   :  { %3648 = vmatprep.subr.bf16.mxu1 %v3647_v55 }
 0xa9f   :  { %3678 = vmatpush3.bf16.msra.mxu0 %v3675_v42 }
 0xaa0   :  { %3650 = vmatpush1.bf16.msra.mxu1 %v3649_v59  ;;  %3680 = vmatprep.subr.bf16.mxu0 %v3679_v23 }
 0xaa3   :  { %3682 = vmatpush3.bf16.msra.mxu0 %v3679_v23 }
 0xb21   :  { %v1248_v60 = vpop.xlane.xlu0 %1247 }
 0xb22   :  { %v1250_v61 = vmul.f32 0.015625, %v1248_v60  ;;  %v1245_v3 = vpop.xlane.xlu1 %1244 }
 0xb23   :  { %v1249_v4 = vmul.f32 0.015625, %v1245_v3 }
 0xb24   :  { %v1252_v5 = vadd.f32 1e-05, %v1250_v61 }
 0xb25   :  { %v1251_v9 = vadd.f32 1e-05, %v1249_v4 }
 0xb26   :  { %3941 = vrsqrt.f32 %v1252_v5 }
 0xb27   :  { %3943 = vrsqrt.f32 %v1251_v9 }
 0xb30   :  { %v3942_v12 = vpop.eup %3941 }
 0xb31   :  { %v3944_v13 = vpop.eup %3943  ;;  %v1256_v17 = vmul.f32 %v3942_v12, %v4409_v8 }
 0xb32   :  { %v1255_v15 = vmul.f32 %v3944_v13, %v4412_v6 }
 0xb33   :  { %v1264_v18 = vmul.f32 %v3039_v14, %v1256_v17  ;;  %v3053_v17 = vld [vmem:[%s4915_s5 + $0xf8] sm:$0xff] }
 0xb34   :  { %v1263_v16 = vmul.f32 %v3039_v14, %v1255_v15  ;;  %v3046_v14 = vld [vmem:[%s4915_s5 + $0xc0] sm:$0xff]  ;;  %v3049_v15 = vld [vmem:[%s4915_s5 + $0xd8] sm:$0xff] }
 0xb36   :  { %3040 = vmatmul.mubr.msk.f32.vlgmr.msra.gmra.mrb[12].mxu1 %vm66_vm0, %v1263_v16  ;;  %v3685_v16 = vpack.c.bf16 %v3049_v15, %v3046_v14 }
 0xb37   :  { %1357 = vmatprep.mubr.f32.mxu1 %v4033_v28 }
 0xb3a   :  { %3041 = vmatmul.mubr.msk.f32.gmra.mrb[14].mxu1 %vm66_vm0, %v1264_v18  ;;  %v3056_v18 = vld [vmem:[%s4915_s5 + $0x110] sm:$0xff] }
 0xb3b   :  { %1594 = vmatprep.mubr.f32.mxu1 %v4033_v28  ;;  %v3687_v20 = vpack.c.bf16 %v3056_v18, %v3053_v17 }
 0xc09   :  { %v1353_v44 = vpop.f32.mrb[12].mxu1 }
 0xc0a   :  { %v3042_v45 = vmul.f32 -1.442695, %v1353_v44  ;;  %v1355_v46 = vpop.f32.mrb[13].mxu1 }
 0xc0c   :  { %3945 = vpow2.f32 %v3042_v45 }
 0xc0d   :  { %v1359_v26 = vpop.f32.mrb[14].mxu1 }
 0xc0e   :  { %v3043_v47 = vmul.f32 -1.442695, %v1359_v26  ;;  %v1361_v48 = vpop.f32.mrb[15].mxu1 }
 0xc10   :  { %3947 = vpow2.f32 %v3043_v47  ;;  %v3054_v47 = vld [vmem:[%s4915_s5 + $0x100] sm:$0xff] }
 0xc16   :  { %v3946_v49 = vpop.eup %3945 }
 0xc17   :  { %v1370_v50 = vadd.f32 1.0, %v3946_v49 }
 0xc19   :  { %3949 = vrcp.f32 %v1370_v50 }
 0xc1a   :  { %v3948_v51 = vpop.eup %3947 }
 0xc1b   :  { %v1371_v52 = vadd.f32 1.0, %v3948_v51 }
 0xc1d   :  { %3951 = vrcp.f32 %v1371_v52 }
 0xc23   :  { %v3950_v7 = vpop.eup %3949 }
 0xc24   :  { %v1376_v53 = vmul.f32 %v3950_v7, %v1353_v44  ;;  %v3060_v7 = vld [vmem:[%s4915_s5 + $0x130] sm:$0xff] }
 0xc26   :  { %v1378_v54 = vmul.f32 %v1376_v53, %v1355_v46  ;;  %v3063_v53 = vld [vmem:[%s4915_s5 + $0x148] sm:$0xff] }
 0xc27   :  { %v3952_v55 = vpop.eup %3951 }
 0xc28   :  { %v1377_v56 = vmul.f32 %v3952_v55, %v1359_v26  ;;  %3415 = vmatprep.mubr.f32.mxu0 %v1378_v54  ;;  %v3045_v26 = vld [vmem:[%s4914_s4 + $0x1] ss:$0 sm:$0xff]  ;;  %v3707_v55 = vpack.c.bf16 %v3063_v53, %v3060_v7 }
 0xc2a   :  { %v1379_v57 = vmul.f32 %v1377_v56, %v1361_v48  ;;  %v3057_v48 = vld [vmem:[%s4915_s5 + $0x118] sm:$0xff]  ;;  %v3066_v56 = vld [vmem:[%s4915_s5 + $0x160] sm:$0xff] }
 0xc2b   :  { %v3703_v51 = vpack.c.bf16 %v3057_v48, %v3054_v47 }
 0xc2c   :  { %3416 = vmatmul.mubr.f32.vlgmr.msra.gmra.mrb[12].mxu0 %v1379_v57  ;;  %v3069_v57 = vld [vmem:[%s4915_s5 + $0x178] sm:$0xff] }
 0xcff   :  { %v3417_v59 = vpop.f32.mrb[12].mxu0 }
 0xd00   :  { %v4526_v60 = vadd.f32 %v3417_v59, %v4409_v8  ;;  %v1462_v61 = vpop.f32.mrb[13].mxu0  ;;  %v3047_v8 = vld [vmem:[%s4915_s5 + $0xc8] sm:$0xff]  ;;  %v3711_v59 = vpack.c.bf16 %v3069_v57, %v3066_v56 }
 0xd01   :  { %v4529_v3 = vadd.f32 %v1462_v61, %v4412_v6  ;;  %v3050_v6 = vld [vmem:[%s4915_s5 + $0xe0] sm:$0xff] }
 0xd02   :  { %v1476_v4 = vmul.f32 %v4526_v60, %v4526_v60  ;;  %v3683_v13 = vpack.c.bf16 %v3050_v6, %v3047_v8 }
 0xd03   :  { %v1475_v5 = vmul.f32 %v4529_v3, %v4529_v3 }
 0xd04   :  { %v1480_v9 = vsel %vm66_vm0, %v1476_v4, 0.0  ;;  %3684 = vmatprep.subr.bf16.mxu1 %v3683_v13 }
 0xd05   :  { %1481 = vadd.xlane.f32.xlu1 %v1480_v9  ;;  %v1477_v12 = vsel %vm66_vm0, %v1475_v5, 0.0  ;;  %3686 = vmatpush1.bf16.msra.mxu1 %v3685_v16 }
 0xd06   :  { %1478 = vadd.xlane.f32.xlu0 %v1477_v12  ;;  %3688 = vmatprep.subr.bf16.mxu1 %v3687_v20 }
 0xd09   :  { %3690 = vmatpush1.bf16.msra.mxu1 %v3689_v25 }
 0xd0a   :  { %3692 = vmatprep.subr.bf16.mxu1 %v3691_v2 }
 0xd0d   :  { %3694 = vmatpush1.bf16.msra.mxu1 %v3693_v33 }
 0xd0e   :  { %3696 = vmatprep.subr.bf16.mxu1 %v3695_v36 }
 0xd11   :  { %3698 = vmatpush1.bf16.msra.mxu1 %v3697_v39 }
 0xd12   :  { %3700 = vmatprep.subr.bf16.mxu1 %v3699_v0 }
 0xd92   :  { %v1482_v41 = vpop.xlane.xlu1 %1481 }
 0xd93   :  { %v1484_v42 = vmul.f32 0.015625, %v1482_v41  ;;  %v1479_v21 = vpop.xlane.xlu0 %1478 }
 0xd94   :  { %v1483_v43 = vmul.f32 0.015625, %v1479_v21 }
 0xd95   :  { %v1486_v23 = vadd.f32 1e-05, %v1484_v42 }
 0xd96   :  { %v1485_v44 = vadd.f32 1e-05, %v1483_v43 }
 0xd97   :  { %3953 = vrsqrt.f32 %v1486_v23 }
 0xd98   :  { %3955 = vrsqrt.f32 %v1485_v44 }
 0xda1   :  { %v3954_v45 = vpop.eup %3953 }
 0xda2   :  { %v3956_v46 = vpop.eup %3955  ;;  %v1490_v52 = vmul.f32 %v3954_v45, %v4526_v60 }
 0xda3   :  { %v1489_v49 = vmul.f32 %v3956_v46, %v4529_v3 }
 0xda4   :  { %v1498_v54 = vmul.f32 %v3045_v26, %v1490_v52 }
 0xda5   :  { %v1497_v50 = vmul.f32 %v3045_v26, %v1489_v49 }
 0xda7   :  { %3070 = vmatmul.mubr.msk.f32.vlgmr.msra.gmra.mrb[16].mxu1 %vm66_vm0, %v1497_v50 }
 0xda8   :  { %3702 = vmatpush3.bf16.msra.mxu1 %v3699_v0  ;;  %1600 = vmatprep.mubr.f32.mxu1 %v4033_v28 }
 0xda9   :  { %3704 = vmatprep.subr.bf16.mxu1 %v3703_v51 }
 0xdab   :  { %3071 = vmatmul.mubr.msk.f32.gmra.mrb[18].mxu1 %vm66_vm0, %v1498_v54 }
 0xdac   :  { %3706 = vmatpush3.bf16.msra.mxu1 %v3703_v51  ;;  %3434 = vmatprep.mubr.msk.f32.mxu1 %vm66_vm0, %v1497_v50 }
 0xdad   :  { %3708 = vmatprep.subr.bf16.mxu1 %v3707_v55 }
 0xdb0   :  { %3710 = vmatpush3.bf16.msra.mxu1 %v3707_v55 }
 0xdb1   :  { %3712 = vmatprep.subr.bf16.mxu1 %v3711_v59 }
 0xdb4   :  { %3714 = vmatpush3.bf16.msra.mxu1 %v3711_v59 }
 0xdb7   :  { %3435 = vmatmul.mubr.msk.f32.vlgmr.msra.gmra.mrb[20].mxu1 %vm66_vm0, %v1498_v54 }
 0xe7a   :  { %v1596_v61 = vpop.f32.mrb[16].mxu1 }
 0xe7b   :  { %v1598_v4 = vpop.f32.mrb[17].mxu1  ;;  %v1684_v13 = vmul.f32 %v1596_v61, %v4225_v58  ;;  %v1682_v27 = vmul.f32 %v1596_v61, %v4242_v10 }
 0xe7c   :  { %v1698_v5 = vmul.f32 %v1598_v4, %v4225_v58  ;;  %v1696_v20 = vmul.f32 %v1598_v4, %v4242_v10  ;;  %v4003_v10 = vld [vmem:[%s4911_s1 + $0x8] sm:$0xff] }
 0xe7e   :  { %1702 = vrot.lane.b32.xlu0 %v1698_v5, %s4034_s13  ;;  %v1602_v9 = vpop.f32.mrb[18].mxu1 }
 0xe7f   :  { %v1685_v12 = vmul.f32 %v1602_v9, %v4228_v62  ;;  %v1604_v8 = vpop.f32.mrb[19].mxu1  ;;  %v1683_v31 = vmul.f32 %v4003_v10, %v1602_v9  ;;  %v4676_v9 = vld [vmem:[%s4913_s3 + $0x8] sm:$0xff] }
 0xe80   :  { %v1699_v6 = vmul.f32 %v1604_v8, %v4228_v62  ;;  %v1697_v62 = vmul.f32 %v1604_v8, %v4247_v11  ;;  %v4682_v8 = vld [vmem:[%s4913_s3] sm:$0xff] }
 0xe82   :  { %1690 = vrot.lane.b32.xlu0 %v1685_v12, %s4034_s13  ;;  %1704 = vrot.lane.b32.xlu1 %v1699_v6, %s4034_s13 }
 0xe86   :  { %1688 = vrot.lane.b32.xlu1 %v1684_v13, %s4034_s13 }
 0xe8a   :  { %v3436_v14 = vpop.f32.mrb[20].mxu1 }
 0xe8b   :  { %v1673_v15 = vpop.f32.mrb[21].mxu1 }
 0xe8c   :  { %v3721_v16 = vpack.c.bf16 %v3436_v14, %v1673_v15  ;;  %v4627_v17 = vpack.i.bf16 %v3436_v14, %v1673_v15 }
 0xe8e   :  { %3722 = vmatprep.subr.bf16.mxu1 %v3721_v16 }
 0xe8f   :  { %3724 = vmatpush3.bf16.msra.mxu1 %v3721_v16 }
 0xef0   :  { %v1703_v18 = vpop.permute.xlu0 %1702 }
 0xef1   :  { %v1708_v24 = vadd.f32 %v1703_v18, %v1696_v20 }
 0xef4   :  { %v1705_v22 = vpop.permute.xlu1 %1704  ;;  %v1691_v11 = vpop.permute.xlu0 %1690 }
 0xef5   :  { %v1709_v25 = vadd.f32 %v1705_v22, %v1697_v62  ;;  %v4645_v33 = vadd.f32 %v1691_v11, %v1683_v31 }
 0xef7   :  { %v3715_v58 = vpack.c.bf16 %v1709_v25, %v1708_v24  ;;  %v4632_v63 = vpack.i.bf16 %v1709_v25, %v1708_v24 }
 0xef8   :  { %v1689_v2 = vpop.permute.xlu1 %1688 }
 0xef9   :  { %v4634_v30 = vadd.f32 %v1689_v2, %v1682_v27  ;;  %3717 = vmatprep.subr.msk.bf16.mxu0 %vm4254_vm2, %v3715_v58 }
 0xefa   :  { %3720 = vmatpush3.bf16.xpose.msk.msra.mxu0 %vm4254_vm2, %v3715_v58 }
 0xefb   :  { %3441 = vmatprep.mubr.msk.f32.mxu0 %vm308_vm1, %v4634_v30 }
 0xf01   :  { %3442 = vmatmul.mubr.msk.f32.vlgmr.msra.gmra.mrb[14].mxu0 %vm308_vm1, %v4645_v33 }
 0xfd4   :  { %v3443_v34 = vpop.f32.mrb[14].mxu0 }
 0xfd5   :  { %v1798_v35 = vmul.f32 0.25, %v3443_v34  ;;  %v1788_v36 = vpop.f32.mrb[15].mxu0 }
 0xfd6   :  { %v1797_v37 = vmul.f32 0.25, %v1788_v36 }
 0xfd7   :  { %v1800_v38 = vadd.f32 %v1798_v35, %v4276_v29 }
 0xfd8   :  { %v1799_v39 = vadd.f32 %v1797_v37, %v4281_v32 }
 0xfd9   :  { %v1804_v40 = vsel %vm308_vm1, %v1800_v38, -inf }
 0xfda   :  { %1805 = vmax.xlane.f32.xlu0 %v1804_v40  ;;  %v1801_v1 = vsel %vm308_vm1, %v1799_v39, -inf }
 0xfdb   :  { %1802 = vmax.xlane.f32.xlu1 %v1801_v1 }
0x1067   :  { %v1806_v0 = vpop.xlane.xlu0 %1805 }
0x1068   :  { %v1808_v41 = vsub.f32 %v1800_v38, %v1806_v0  ;;  %v1803_v42 = vpop.xlane.xlu1 %1802 }
0x1069   :  { %v1807_v21 = vsub.f32 %v1799_v39, %v1803_v42 }
0x106a   :  { %v1811_v43 = vmul.f32 1.442695, %v1808_v41 }
0x106b   :  { %v1809_v23 = vmul.f32 1.442695, %v1807_v21 }
0x106c   :  { %3957 = vpow2.f32 %v1811_v43 }
0x106d   :  { %3959 = vpow2.f32 %v1809_v23 }
0x1076   :  { %v3958_v44 = vpop.eup %3957 }
0x1077   :  { %v3960_v45 = vpop.eup %3959  ;;  %v1816_v29 = vsel %vm308_vm1, %v3958_v44, 0.0 }
0x1078   :  { %1817 = vadd.xlane.f32.xlu1 %v1816_v29  ;;  %v1813_v32 = vsel %vm308_vm1, %v3960_v45, 0.0 }
0x1079   :  { %1814 = vadd.xlane.f32.xlu0 %v1813_v32 }
0x1089   :  { %1904 = vrot.lane.b32.xlu1 %v4634_v30, %s4036_s25 }
0x108d   :  { %1906 = vrot.lane.b32.xlu1 %v4645_v33, %s4036_s25 }
0x108f   :  { %3876 = vrot.lane.b32.xlu0 %v4632_v63, %s4036_s25 }
0x1105   :  { %v1818_v46 = vpop.xlane.xlu1 %1817 }
0x1106   :  { %3961 = vrcp.f32 %v1818_v46  ;;  %v1815_v26 = vpop.xlane.xlu0 %1814 }
0x1107   :  { %3963 = vrcp.f32 %v1815_v26 }
0x1109   :  { %v1905_v54 = vpop.permute.xlu1 %1904 }
0x110a   :  { %v3877_v47 = vpop.permute.xlu0 %3876 }
0x110b   :  { %v3879_v48 = vunpack.i.h.bf16 %v3877_v47  ;;  %v3878_v49 = vunpack.i.l.bf16 %v3877_v47 }
0x110d   :  { %v3725_v50 = vpack.c.bf16 %v3879_v48, %v3878_v49  ;;  %v1907_v55 = vpop.permute.xlu1 %1906 }
0x110f   :  { %3727 = vmatprep.subr.msk.bf16.mxu1 %vm4254_vm2, %v3725_v50 }
0x1110   :  { %v3962_v51 = vpop.eup %3961 }
0x1111   :  { %v3964_v52 = vpop.eup %3963  ;;  %v1822_v53 = vmul.f32 %v3962_v51, %v3958_v44 }
0x1112   :  { %v1820_v7 = vmul.f32 %v3964_v52, %v3960_v45 }
0x1114   :  { %3448 = vmatprep.mubr.msk.f32.mxu1 %vm308_vm1, %v1820_v7 }
0x1115   :  { %3449 = vmatmul.mubr.msk.f32.vlgmr.msra.gmra.mrb[22].mxu1 %vm308_vm1, %v1822_v53 }
0x1116   :  { %3730 = vmatpush3.bf16.xpose.msk.msra.mxu1 %vm4254_vm2, %v3725_v50  ;;  %3455 = vmatprep.mubr.msk.f32.mxu1 %vm308_vm1, %v1905_v54 }
0x111d   :  { %3456 = vmatmul.mubr.msk.f32.vlgmr.msra.gmra.mrb[24].mxu1 %vm308_vm1, %v1907_v55 }
0x11e8   :  { %v4669_v56 = vpop.f32.mrb[22].mxu1 }
0x11e9   :  { %v4671_v57 = vpop.f32.mrb[23].mxu1 }
0x11f0   :  { %v3457_v59 = vpop.f32.mrb[24].mxu1 }
0x11f1   :  { %v1996_v61 = vmul.f32 0.25, %v3457_v59  ;;  %v1986_v4 = vpop.f32.mrb[25].mxu1 }
0x11f2   :  { %v1995_v5 = vmul.f32 0.25, %v1986_v4 }
0x11f3   :  { %v1998_v12 = vadd.f32 %v4676_v9, %v1996_v61 }
0x11f4   :  { %v1997_v6 = vadd.f32 %v4682_v8, %v1995_v5 }
0x11f5   :  { %v2002_v13 = vsel %vm308_vm1, %v1998_v12, -inf }
0x11f6   :  { %2003 = vmax.xlane.f32.xlu1 %v2002_v13  ;;  %v1999_v14 = vsel %vm308_vm1, %v1997_v6, -inf }
0x11f7   :  { %2000 = vmax.xlane.f32.xlu0 %v1999_v14 }
0x1207   :  { %3881 = vrot.lane.b32.xlu1 %v4627_v17, %s4036_s25 }
0x120b   :  { %2110 = vrot.lane.b32.xlu1 %v4634_v30, %s4035_s24 }
0x120f   :  { %2112 = vrot.lane.b32.xlu1 %v4645_v33, %s4035_s24 }
0x1283   :  { %v2004_v15 = vpop.xlane.xlu1 %2003 }
0x1284   :  { %v2006_v16 = vsub.f32 %v1998_v12, %v2004_v15  ;;  %v2001_v18 = vpop.xlane.xlu0 %2000 }
0x1285   :  { %v2005_v20 = vsub.f32 %v1997_v6, %v2001_v18 }
0x1286   :  { %v2009_v62 = vmul.f32 1.442695, %v2006_v16 }
0x1287   :  { %v2007_v22 = vmul.f32 1.442695, %v2005_v20  ;;  %v3882_v24 = vpop.permute.xlu1 %3881 }
0x1288   :  { %3965 = vpow2.f32 %v2009_v62  ;;  %v3884_v25 = vunpack.i.h.bf16 %v3882_v24  ;;  %v3883_v27 = vunpack.i.l.bf16 %v3882_v24 }
0x1289   :  { %3967 = vpow2.f32 %v2007_v22 }
0x128a   :  { %v3731_v58 = vpack.c.bf16 %v3884_v25, %v3883_v27 }
0x128b   :  { %v2111_v42 = vpop.permute.xlu1 %2110 }
0x128c   :  { %3732 = vmatprep.subr.bf16.mxu0 %v3731_v58 }
0x128d   :  { %3734 = vmatpush3.bf16.msra.mxu0 %v3731_v58 }
0x128f   :  { %v2113_v21 = vpop.permute.xlu1 %2112 }
0x1292   :  { %v3966_v2 = vpop.eup %3965 }
0x1293   :  { %v2014_v11 = vsel %vm308_vm1, %v3966_v2, 0.0  ;;  %v3968_v10 = vpop.eup %3967 }
0x1294   :  { %2015 = vadd.xlane.f32.xlu0 %v2014_v11  ;;  %v2011_v31 = vsel %vm308_vm1, %v3968_v10, 0.0 }
0x1298   :  { %2012 = vadd.xlane.f32.xlu0 %v2011_v31 }
0x12ae   :  { %3886 = vrot.lane.b32.xlu0 %v4632_v63, %s4035_s24 }
0x1321   :  { %v2016_v34 = vpop.xlane.xlu0 %2015 }
0x1322   :  { %3969 = vrcp.f32 %v2016_v34 }
0x1325   :  { %v2013_v35 = vpop.xlane.xlu0 %2012 }
0x1326   :  { %3971 = vrcp.f32 %v2013_v35 }
0x1329   :  { %v3887_v36 = vpop.permute.xlu0 %3886 }
0x132a   :  { %v3889_v37 = vunpack.i.h.bf16 %v3887_v36  ;;  %v3888_v38 = vunpack.i.l.bf16 %v3887_v36 }
0x132c   :  { %v3735_v39 = vpack.c.bf16 %v3889_v37, %v3888_v38  ;;  %v3970_v40 = vpop.eup %3969 }
0x132d   :  { %v2020_v41 = vmul.f32 %v3970_v40, %v3966_v2 }
0x132e   :  { %3737 = vmatprep.subr.msk.bf16.mxu0 %vm4254_vm2, %v3735_v39 }
0x1330   :  { %v3972_v1 = vpop.eup %3971 }
0x1331   :  { %v2018_v0 = vmul.f32 %v3972_v1, %v3968_v10 }
0x1333   :  { %3462 = vmatprep.mubr.msk.f32.mxu0 %vm308_vm1, %v2018_v0 }
0x1334   :  { %3463 = vmatmul.mubr.msk.f32.vlgmr.msra.gmra.mrb[16].mxu0 %vm308_vm1, %v2020_v41 }
0x1335   :  { %3740 = vmatpush3.bf16.xpose.msk.msra.mxu0 %vm4254_vm2, %v3735_v39  ;;  %3469 = vmatprep.mubr.msk.f32.mxu0 %vm308_vm1, %v2111_v42 }
0x133c   :  { %3470 = vmatmul.mubr.msk.f32.vlgmr.msra.gmra.mrb[18].mxu0 %vm308_vm1, %v2113_v21 }
0x1407   :  { %v4705_v43 = vpop.f32.mrb[16].mxu0 }
0x1408   :  { %v4707_v23 = vpop.f32.mrb[17].mxu0 }
0x140f   :  { %v3471_v44 = vpop.f32.mrb[18].mxu0 }
0x1410   :  { %v2202_v45 = vmul.f32 0.25, %v3471_v44  ;;  %v2192_v29 = vpop.f32.mrb[19].mxu0 }
0x1411   :  { %v2201_v32 = vmul.f32 0.25, %v2192_v29 }
0x1412   :  { %v2204_v46 = vadd.f32 %v4676_v9, %v2202_v45 }
0x1413   :  { %v2203_v26 = vadd.f32 %v4682_v8, %v2201_v32 }
0x1414   :  { %v2208_v47 = vsel %vm308_vm1, %v2204_v46, -inf }
0x1415   :  { %2209 = vmax.xlane.f32.xlu1 %v2208_v47  ;;  %v2205_v48 = vsel %vm308_vm1, %v2203_v26, -inf  ;;  %v3098_v47 = vld [vmem:[%s4916_s6 + $0x40] sm:$0xff] }
0x1416   :  { %2206 = vmax.xlane.f32.xlu0 %v2205_v48  ;;  %v3100_v48 = vld [vmem:[%s4916_s6 + $0x50] sm:$0xff] }
0x1426   :  { %3891 = vrot.lane.b32.xlu1 %v4627_v17, %s4035_s24 }
0x142a   :  { %2314 = vrot.lane.b32.xlu1 %v4634_v30, %s4037_s26 }
0x142e   :  { %2316 = vrot.lane.b32.xlu1 %v4645_v33, %s4037_s26 }
0x14a2   :  { %v2210_v49 = vpop.xlane.xlu1 %2209 }
0x14a3   :  { %v2212_v50 = vsub.f32 %v2204_v46, %v2210_v49  ;;  %v2207_v51 = vpop.xlane.xlu0 %2206 }
0x14a4   :  { %v2211_v52 = vsub.f32 %v2203_v26, %v2207_v51 }
0x14a5   :  { %v2215_v7 = vmul.f32 1.442695, %v2212_v50  ;;  %v3101_v50 = vld [vmem:[%s4916_s6 + $0x58] sm:$0xff] }
0x14a6   :  { %v2213_v53 = vmul.f32 1.442695, %v2211_v52  ;;  %v3892_v54 = vpop.permute.xlu1 %3891  ;;  %v3759_v51 = vpack.c.bf16 %v3101_v50, %v3100_v48  ;;  %v3102_v52 = vld [vmem:[%s4916_s6 + $0x60] sm:$0xff] }
0x14a7   :  { %3973 = vpow2.f32 %v2215_v7  ;;  %v3894_v55 = vunpack.i.h.bf16 %v3892_v54  ;;  %v3893_v59 = vunpack.i.l.bf16 %v3892_v54  ;;  %v3103_v7 = vld [vmem:[%s4916_s6 + $0x68] sm:$0xff]  ;;  %v3104_v54 = vld [vmem:[%s4916_s6 + $0x70] sm:$0xff] }
0x14a8   :  { %3975 = vpow2.f32 %v2213_v53  ;;  %v3763_v53 = vpack.c.bf16 %v3103_v7, %v3102_v52 }
0x14a9   :  { %v3741_v61 = vpack.c.bf16 %v3894_v55, %v3893_v59  ;;  %v3105_v55 = vld [vmem:[%s4916_s6 + $0x78] sm:$0xff] }
0x14aa   :  { %v2315_v24 = vpop.permute.xlu1 %2314  ;;  %v3767_v59 = vpack.c.bf16 %v3105_v55, %v3104_v54  ;;  %v3131_v54 = vld [vmem:[%s4919_s9 + $0x88] sm:$0xff] }
0x14ab   :  { %3742 = vmatprep.subr.bf16.mxu1 %v3741_v61 }
0x14ac   :  { %3744 = vmatpush3.bf16.msra.mxu1 %v3741_v61 }
0x14b1   :  { %v3974_v4 = vpop.eup %3973 }
0x14b2   :  { %v2220_v30 = vsel %vm308_vm1, %v3974_v4, 0.0  ;;  %v3976_v5 = vpop.eup %3975 }
0x14b3   :  { %2221 = vadd.xlane.f32.xlu0 %v2220_v30  ;;  %v2217_v33 = vsel %vm308_vm1, %v3976_v5, 0.0 }
0x14b7   :  { %2218 = vadd.xlane.f32.xlu0 %v2217_v33 }
0x14cd   :  { %3896 = vrot.lane.b32.xlu0 %v4632_v63, %s4037_s26  ;;  %v2317_v63 = vpop.permute.xlu1 %2316 }
0x1540   :  { %v2222_v12 = vpop.xlane.xlu0 %2221 }
0x1541   :  { %3977 = vrcp.f32 %v2222_v12 }
0x1544   :  { %v2219_v6 = vpop.xlane.xlu0 %2218 }
0x1545   :  { %3979 = vrcp.f32 %v2219_v6 }
0x1548   :  { %v3897_v13 = vpop.permute.xlu0 %3896 }
0x1549   :  { %v3899_v14 = vunpack.i.h.bf16 %v3897_v13  ;;  %v3898_v15 = vunpack.i.l.bf16 %v3897_v13 }
0x154b   :  { %v3745_v16 = vpack.c.bf16 %v3899_v14, %v3898_v15  ;;  %v3978_v18 = vpop.eup %3977 }
0x154c   :  { %v2226_v22 = vmul.f32 %v3978_v18, %v3974_v4 }
0x154d   :  { %3747 = vmatprep.subr.msk.bf16.mxu1 %vm4254_vm2, %v3745_v16 }
0x154f   :  { %v3980_v20 = vpop.eup %3979 }
0x1550   :  { %v2224_v62 = vmul.f32 %v3980_v20, %v3976_v5 }
0x1552   :  { %3476 = vmatprep.mubr.msk.f32.mxu1 %vm308_vm1, %v2224_v62 }
0x1553   :  { %3477 = vmatmul.mubr.msk.f32.vlgmr.msra.gmra.mrb[26].mxu1 %vm308_vm1, %v2226_v22 }
0x1554   :  { %3750 = vmatpush3.bf16.xpose.msk.msra.mxu1 %vm4254_vm2, %v3745_v16  ;;  %3483 = vmatprep.mubr.msk.f32.mxu1 %vm308_vm1, %v2315_v24 }
0x155b   :  { %3484 = vmatmul.mubr.msk.f32.vlgmr.msra.gmra.mrb[28].mxu1 %vm308_vm1, %v2317_v63 }
0x155c   :  { %2753 = vmatprep.mubr.f32.mxu1 %v4033_v28 }
0x1626   :  { %v3478_v25 = vpop.f32.mrb[26].mxu1 }
0x1627   :  { %v2305_v27 = vpop.f32.mrb[27].mxu1 }
0x162e   :  { %v3485_v58 = vpop.f32.mrb[28].mxu1 }
0x162f   :  { %v2406_v2 = vmul.f32 0.25, %v3485_v58  ;;  %v2396_v11 = vpop.f32.mrb[29].mxu1 }
0x1630   :  { %v2405_v10 = vmul.f32 0.25, %v2396_v11  ;;  %v3110_v11 = vld [vmem:[%s4918_s8 + $0x80] sm:$0xff] }
0x1631   :  { %v2408_v31 = vadd.f32 %v4676_v9, %v2406_v2 }
0x1632   :  { %v2407_v34 = vadd.f32 %v4682_v8, %v2405_v10  ;;  %v3112_v10 = vld [vmem:[%s4918_s8 + $0x90] sm:$0xff] }
0x1633   :  { %v2412_v19 = vsel %vm308_vm1, %v2408_v31, -inf }
0x1634   :  { %2413 = vmax.xlane.f32.xlu1 %v2412_v19  ;;  %v2409_v35 = vsel %vm308_vm1, %v2407_v34, -inf  ;;  %v3117_v19 = vld [vmem:[%s4918_s8 + $0xb8] sm:$0xff] }
0x1635   :  { %2410 = vmax.xlane.f32.xlu0 %v2409_v35 }
0x1645   :  { %3901 = vrot.lane.b32.xlu1 %v4627_v17, %s4037_s26 }
0x1649   :  { %2522 = vrot.lane.b32.xlu1 %v4705_v43, %s4032_s14 }
0x164d   :  { %2528 = vrot.lane.b32.xlu1 %v2305_v27, %s4038_s27 }
0x16c1   :  { %v2414_v36 = vpop.xlane.xlu1 %2413 }
0x16c2   :  { %v2416_v37 = vsub.f32 %v2408_v31, %v2414_v36  ;;  %v2411_v38 = vpop.xlane.xlu0 %2410  ;;  %v3773_v31 = vpack.c.bf16 %v3112_v10, %v3110_v11  ;;  %v3114_v36 = vld [vmem:[%s4918_s8 + $0xa0] sm:$0xff] }
0x16c3   :  { %v2415_v9 = vsub.f32 %v2407_v34, %v2411_v38  ;;  %v3115_v34 = vld [vmem:[%s4918_s8 + $0xa8] sm:$0xff] }
0x16c4   :  { %v2419_v39 = vmul.f32 1.442695, %v2416_v37  ;;  %v3775_v35 = vpack.c.bf16 %v3117_v19, %v3115_v34  ;;  %v3116_v37 = vld [vmem:[%s4918_s8 + $0xb0] sm:$0xff] }
0x16c5   :  { %v2417_v8 = vmul.f32 1.442695, %v2415_v9  ;;  %v3902_v40 = vpop.permute.xlu1 %3901  ;;  %v3777_v38 = vpack.c.bf16 %v3116_v37, %v3114_v36  ;;  %v3119_v9 = vld [vmem:[%s4918_s8 + $0xc8] sm:$0xff] }
0x16c6   :  { %v3904_v1 = vunpack.i.h.bf16 %v3902_v40  ;;  %v3903_v0 = vunpack.i.l.bf16 %v3902_v40  ;;  %v3118_v40 = vld [vmem:[%s4918_s8 + $0xc0] sm:$0xff] }
0x16c7   :  { %3981 = vpow2.f32 %v2417_v8 }
0x16c8   :  { %v3751_v41 = vpack.c.bf16 %v3904_v1, %v3903_v0  ;;  %3983 = vpow2.f32 %v2419_v39  ;;  %v3121_v39 = vld [vmem:[%s4918_s8 + $0xd8] sm:$0xff]  ;;  %v3120_v1 = vld [vmem:[%s4918_s8 + $0xd0] sm:$0xff] }
0x16c9   :  { %v2523_v5 = vpop.permute.xlu1 %2522  ;;  %v3779_v8 = vpack.c.bf16 %v3121_v39, %v3119_v9  ;;  %v3781_v0 = vpack.c.bf16 %v3120_v1, %v3118_v40 }
0x16ca   :  { %3752 = vmatprep.subr.bf16.mxu0 %v3751_v41  ;;  %v2543_v14 = vsel %vm308_vm1, %v4669_v56, %v2523_v5 }
0x16cb   :  { %3754 = vmatpush3.bf16.msra.mxu0 %v3751_v41  ;;  %v3123_v41 = vld [vmem:[%s4918_s8 + $0xe8] sm:$0xff] }
0x16cd   :  { %v2529_v12 = vpop.permute.xlu1 %2528 }
0x16d1   :  { %v3982_v17 = vpop.eup %3981 }
0x16d2   :  { %v2421_v42 = vsel %vm308_vm1, %v3982_v17, 0.0  ;;  %v3984_v21 = vpop.eup %3983 }
0x16d3   :  { %2422 = vadd.xlane.f32.xlu0 %v2421_v42  ;;  %v2424_v43 = vsel %vm308_vm1, %v3984_v21, 0.0 }
0x16d7   :  { %2425 = vadd.xlane.f32.xlu0 %v2424_v43  ;;  %v3124_v43 = vld [vmem:[%s4918_s8 + $0xf0] sm:$0xff] }
0x16ed   :  { %2520 = vrot.lane.b32.xlu0 %v4707_v23, %s4032_s14  ;;  %v3099_v23 = vld [vmem:[%s4916_s6 + $0x48] sm:$0xff] }
0x16ee   :  { %v3755_v49 = vpack.c.bf16 %v3099_v23, %v3098_v47 }
0x16f0   :  { %3756 = vmatprep.subr.bf16.mxu0 %v3755_v49 }
0x16f1   :  { %2530 = vrot.lane.b32.xlu0 %v3478_v25, %s4038_s27 }
0x1760   :  { %v2423_v44 = vpop.xlane.xlu0 %2422 }
0x1761   :  { %3985 = vrcp.f32 %v2423_v44 }
0x1764   :  { %v2426_v45 = vpop.xlane.xlu0 %2425 }
0x1765   :  { %3987 = vrcp.f32 %v2426_v45 }
0x1768   :  { %v2521_v30 = vpop.permute.xlu0 %2520 }
0x1769   :  { %v2542_v6 = vsel %vm308_vm1, %v4671_v57, %v2521_v30  ;;  %v3135_v30 = vld [vmem:[%s4919_s9 + $0xa8] sm:$0xff] }
0x176a   :  { %v2544_v16 = vsel %vm1143_vm3, %v2542_v6, %v2529_v12  ;;  %v3137_v12 = vld [vmem:[%s4919_s9 + $0xb8] sm:$0xff] }
0x176b   :  { %v3986_v29 = vpop.eup %3985 }
0x176c   :  { %v2428_v32 = vmul.f32 %v3986_v29, %v3982_v17  ;;  %v2531_v33 = vpop.permute.xlu0 %2530  ;;  %v3125_v17 = vld [vmem:[%s4918_s8 + $0xf8] sm:$0xff] }
0x176d   :  { %v2545_v18 = vsel %vm1143_vm3, %v2543_v14, %v2531_v33  ;;  %v3783_v42 = vpack.c.bf16 %v3125_v17, %v3123_v41  ;;  %v3136_v33 = vld [vmem:[%s4919_s9 + $0xb0] sm:$0xff]  ;;  %v3139_v14 = vld [vmem:[%s4919_s9 + $0xc8] sm:$0xff] }
0x176e   :  { %3490 = vmatprep.mubr.msk.f32.mxu0 %vm308_vm1, %v2428_v32  ;;  %v3799_v6 = vpack.c.bf16 %v3137_v12, %v3136_v33 }
0x176f   :  { %v3988_v46 = vpop.eup %3987 }
0x1770   :  { %v2430_v26 = vmul.f32 %v3988_v46, %v3984_v21  ;;  %v3122_v21 = vld [vmem:[%s4918_s8 + $0xe0] sm:$0xff] }
0x1771   :  { %v3785_v44 = vpack.c.bf16 %v3124_v43, %v3122_v21 }
0x1772   :  { %3491 = vmatmul.mubr.msk.f32.vlgmr.msra.gmra.mrb[20].mxu0 %vm308_vm1, %v2430_v26 }
0x1773   :  { %3758 = vmatpush3.bf16.msra.mxu0 %v3755_v49  ;;  %v3109_v49 = vld [vmem:[%s4917_s7 + $0x1] ss:$0 sm:$0xff] }
0x1774   :  { %3760 = vmatprep.subr.bf16.mxu0 %v3759_v51 }
0x1777   :  { %3762 = vmatpush3.bf16.msra.mxu0 %v3759_v51 }
0x1778   :  { %3764 = vmatprep.subr.bf16.mxu0 %v3763_v53 }
0x177b   :  { %3766 = vmatpush3.bf16.msra.mxu0 %v3763_v53  ;;  %v3130_v53 = vld [vmem:[%s4919_s9 + $0x80] sm:$0xff] }
0x177c   :  { %3768 = vmatprep.subr.bf16.mxu0 %v3767_v59  ;;  %v3787_v55 = vpack.c.bf16 %v3131_v54, %v3130_v53  ;;  %v2909_v53 = vld [vmem:[#allocation2 + $0x40] sm:$0xff]  ;;  %v2911_v54 = vld [vmem:[#allocation2 + $0x50] sm:$0xff] }
0x177f   :  { %3770 = vmatpush3.bf16.msra.mxu0 %v3767_v59  ;;  %v3132_v59 = vld [vmem:[%s4919_s9 + $0x90] sm:$0xff] }
0x1780   :  { %3788 = vmatprep.subr.bf16.mxu0 %v3787_v55 }
0x1845   :  { %v3492_v61 = vpop.f32.mrb[20].mxu0 }
0x1846   :  { %2538 = vrot.lane.b32.xlu0 %v3492_v61, %s4039_s28  ;;  %v2509_v4 = vpop.f32.mrb[21].mxu0  ;;  %v3133_v61 = vld [vmem:[%s4919_s9 + $0x98] sm:$0xff] }
0x1847   :  { %2536 = vrot.lane.b32.xlu1 %v2509_v4, %s4039_s28  ;;  %v3134_v4 = vld [vmem:[%s4919_s9 + $0xa0] sm:$0xff] }
0x1848   :  { %v3795_v5 = vpack.c.bf16 %v3135_v30, %v3134_v4  ;;  %v2913_v4 = vld [vmem:[#allocation2 + $0x60] sm:$0xff]  ;;  %v2915_v30 = vld [vmem:[#allocation2 + $0x70] sm:$0xff] }
0x18b8   :  { %v2539_v13 = vpop.permute.xlu0 %2538 }
0x18b9   :  { %v2537_v15 = vpop.permute.xlu1 %2536  ;;  %v2547_v62 = vsel %vm1146_vm4, %v2545_v18, %v2539_v13  ;;  %v3138_v13 = vld [vmem:[%s4919_s9 + $0xc0] sm:$0xff]  ;;  %v3141_v18 = vld [vmem:[%s4919_s9 + $0xd8] sm:$0xff] }
0x18ba   :  { %v2546_v20 = vsel %vm1146_vm4, %v2544_v16, %v2537_v15  ;;  %v3803_v15 = vpack.c.bf16 %v3139_v14, %v3138_v13  ;;  %v3140_v16 = vld [vmem:[%s4919_s9 + $0xd0] sm:$0xff]  ;;  %v3146_v14 = vld [vmem:[%s4920_s10] ss:$0 sm:$0xff] }
0x18bb   :  { %3509 = vmatprep.mubr.msk.f32.mxu0 %vm66_vm0, %v2546_v20  ;;  %v3807_v20 = vpack.c.bf16 %v3141_v18, %v3140_v16 }
0x18bc   :  { %3510 = vmatmul.mubr.msk.f32.vlgmr.msra.gmra.mrb[22].mxu0 %vm66_vm0, %v2547_v62  ;;  %v3142_v62 = vld [vmem:[%s4919_s9 + $0xe0] sm:$0xff] }
0x18bd   :  { %3790 = vmatpush3.bf16.msra.mxu0 %v3787_v55  ;;  %v3829_v55 = vpack.c.bf16 %v2911_v54, %v2909_v53 }
0x198f   :  { %v3511_v22 = vpop.f32.mrb[22].mxu0 }
0x1990   :  { %v4785_v57 = vadd.f32 %v3511_v22, %v4526_v60  ;;  %v2629_v24 = vpop.f32.mrb[23].mxu0  ;;  %v3111_v60 = vld [vmem:[%s4918_s8 + $0x88] sm:$0xff] }
0x1991   :  { %v4788_v56 = vadd.f32 %v2629_v24, %v4529_v3  ;;  %v3113_v3 = vld [vmem:[%s4918_s8 + $0x98] sm:$0xff]  ;;  %v3143_v22 = vld [vmem:[%s4919_s9 + $0xe8] sm:$0xff] }
0x1992   :  { %v2643_v63 = vmul.f32 %v4785_v57, %v4785_v57  ;;  %v3771_v2 = vpack.c.bf16 %v3113_v3, %v3111_v60  ;;  %v3811_v24 = vpack.c.bf16 %v3143_v22, %v3142_v62 }
0x1993   :  { %v2642_v25 = vmul.f32 %v4788_v56, %v4788_v56 }
0x1994   :  { %v2647_v27 = vsel %vm66_vm0, %v2643_v63, 0.0  ;;  %3772 = vmatprep.subr.bf16.mxu1 %v3771_v2  ;;  %v3144_v63 = vld [vmem:[%s4919_s9 + $0xf0] sm:$0xff] }
0x1995   :  { %2648 = vadd.xlane.f32.xlu0 %v2647_v27  ;;  %v2644_v58 = vsel %vm66_vm0, %v2642_v25, 0.0  ;;  %3774 = vmatpush1.bf16.msra.mxu1 %v3773_v31  ;;  %v3145_v25 = vld [vmem:[%s4919_s9 + $0xf8] sm:$0xff] }
0x1996   :  { %2645 = vadd.xlane.f32.xlu1 %v2644_v58  ;;  %3776 = vmatprep.subr.bf16.mxu1 %v3775_v35  ;;  %v3815_v27 = vpack.c.bf16 %v3145_v25, %v3144_v63 }
0x1999   :  { %3778 = vmatpush1.bf16.msra.mxu1 %v3777_v38 }
0x199a   :  { %3780 = vmatprep.subr.bf16.mxu1 %v3779_v8 }
0x199d   :  { %3782 = vmatpush1.bf16.msra.mxu1 %v3781_v0 }
0x199e   :  { %3784 = vmatprep.subr.bf16.mxu1 %v3783_v42 }
0x19a1   :  { %3786 = vmatpush1.bf16.msra.mxu1 %v3785_v44 }
0x1a22   :  { %v2649_v45 = vpop.xlane.xlu0 %2648 }
0x1a23   :  { %v2651_v29 = vmul.f32 0.015625, %v2649_v45  ;;  %v2646_v32 = vpop.xlane.xlu1 %2645  ;;  %v2902_v45 = vld [vmem:[#allocation2 + $0x8] sm:$0xff] }
0x1a24   :  { %v2650_v46 = vmul.f32 0.015625, %v2646_v32 }
0x1a25   :  { %v2653_v26 = vadd.f32 1e-05, %v2651_v29  ;;  %v2904_v29 = vld [vmem:[#allocation2 + $0x18] sm:$0xff] }
0x1a26   :  { %v2652_v47 = vadd.f32 1e-05, %v2650_v46  ;;  %v3819_v32 = vpack.c.bf16 %v2904_v29, %v2902_v45  ;;  %v2901_v46 = vld [vmem:[#allocation2] sm:$0xff] }
0x1a27   :  { %3989 = vrsqrt.f32 %v2653_v26  ;;  %v2903_v26 = vld [vmem:[#allocation2 + $0x10] sm:$0xff] }
0x1a28   :  { %3991 = vrsqrt.f32 %v2652_v47  ;;  %v3821_v47 = vpack.c.bf16 %v2903_v26, %v2901_v46  ;;  %3820 = vmatprep.subr.bf16.mxu1 %v3819_v32 }
0x1a31   :  { %v3990_v23 = vpop.eup %3989 }
0x1a32   :  { %v3992_v48 = vpop.eup %3991  ;;  %v2657_v52 = vmul.f32 %v3990_v23, %v4785_v57  ;;  %v2908_v23 = vld [vmem:[#allocation2 + $0x38] sm:$0xff] }
0x1a33   :  { %v2656_v50 = vmul.f32 %v3992_v48, %v4788_v56 }
0x1a34   :  { %v2665_v7 = vmul.f32 %v3109_v49, %v2657_v52  ;;  %v2912_v52 = vld [vmem:[#allocation2 + $0x58] sm:$0xff] }
0x1a35   :  { %v2664_v51 = vmul.f32 %v3109_v49, %v2656_v50  ;;  %v2907_v49 = vld [vmem:[#allocation2 + $0x30] sm:$0xff] }
0x1a37   :  { %3126 = vmatmul.mubr.msk.f32.vlgmr.msra.gmra.mrb[30].mxu1 %vm66_vm0, %v2664_v51  ;;  %v2910_v51 = vld [vmem:[#allocation2 + $0x48] sm:$0xff] }
0x1a38   :  { %2759 = vmatprep.mubr.f32.mxu1 %v4033_v28  ;;  %3822 = vmatpush1.bf16.msra.mxu1 %v3821_v47 }
0x1a3b   :  { %3127 = vmatmul.mubr.msk.f32.gmra.mrb[32].mxu1 %vm66_vm0, %v2665_v7  ;;  %v3827_v7 = vpack.c.bf16 %v2912_v52, %v2910_v51 }
0x1a3c   :  { %2984 = vmatprep.mubr.f32.mxu1 %v4033_v28  ;;  %v3791_v28 = vpack.c.bf16 %v3133_v61, %v3132_v59  ;;  %v2914_v59 = vld [vmem:[#allocation2 + $0x68] sm:$0xff]  ;;  %v2916_v61 = vld [vmem:[#allocation2 + $0x78] sm:$0xff] }
0x1a3e   :  { %3792 = vmatprep.subr.bf16.mxu0 %v3791_v28 }
0x1a3f   :  { %3794 = vmatpush3.bf16.msra.mxu0 %v3791_v28  ;;  %v3831_v28 = vpack.c.bf16 %v2916_v61, %v2914_v59 }
0x1a40   :  { %3796 = vmatprep.subr.bf16.mxu0 %v3795_v5 }
0x1a43   :  { %3798 = vmatpush3.bf16.msra.mxu0 %v3795_v5  ;;  %v3833_v5 = vpack.c.bf16 %v2915_v30, %v2913_v4 }
0x1a44   :  { %3800 = vmatprep.subr.bf16.mxu0 %v3799_v6 }
0x1a47   :  { %3802 = vmatpush3.bf16.msra.mxu0 %v3799_v6 }
0x1a48   :  { %3804 = vmatprep.subr.bf16.mxu0 %v3803_v15 }
0x1a4b   :  { %3806 = vmatpush3.bf16.msra.mxu0 %v3803_v15 }
0x1a4c   :  { %3808 = vmatprep.subr.bf16.mxu0 %v3807_v20 }
0x1a4f   :  { %3810 = vmatpush3.bf16.msra.mxu0 %v3807_v20 }
0x1a50   :  { %3812 = vmatprep.subr.bf16.mxu0 %v3811_v24 }
0x1a53   :  { %3814 = vmatpush3.bf16.msra.mxu0 %v3811_v24 }
0x1a54   :  { %3816 = vmatprep.subr.bf16.mxu0 %v3815_v27 }
0x1a57   :  { %3818 = vmatpush3.bf16.msra.mxu0 %v3815_v27 }
0x1b0a   :  { %v2755_v58 = vpop.f32.mrb[30].mxu1 }
0x1b0b   :  { %v3128_v60 = vmul.f32 -1.442695, %v2755_v58  ;;  %v2757_v3 = vpop.f32.mrb[31].mxu1 }
0x1b0d   :  { %3993 = vpow2.f32 %v3128_v60 }
0x1b0e   :  { %v2761_v2 = vpop.f32.mrb[32].mxu1 }
0x1b0f   :  { %v3129_v11 = vmul.f32 -1.442695, %v2761_v2  ;;  %v2763_v10 = vpop.f32.mrb[33].mxu1 }
0x1b11   :  { %3995 = vpow2.f32 %v3129_v11 }
0x1b17   :  { %v3994_v31 = vpop.eup %3993 }
0x1b18   :  { %v2772_v34 = vadd.f32 1.0, %v3994_v31 }
0x1b1a   :  { %3997 = vrcp.f32 %v2772_v34 }
0x1b1b   :  { %v3996_v19 = vpop.eup %3995 }
0x1b1c   :  { %v2773_v35 = vadd.f32 1.0, %v3996_v19 }
0x1b1e   :  { %3999 = vrcp.f32 %v2773_v35 }
0x1b24   :  { %v3998_v36 = vpop.eup %3997 }
0x1b25   :  { %v2778_v37 = vmul.f32 %v3998_v36, %v2755_v58 }
0x1b27   :  { %v2780_v38 = vmul.f32 %v2778_v37, %v2757_v3 }
0x1b28   :  { %v4000_v9 = vpop.eup %3999 }
0x1b29   :  { %v2779_v39 = vmul.f32 %v4000_v9, %v2761_v2  ;;  %3544 = vmatprep.mubr.f32.mxu0 %v2780_v38 }
0x1b2b   :  { %v2781_v8 = vmul.f32 %v2779_v39, %v2763_v10 }
0x1b2d   :  { %3545 = vmatmul.mubr.f32.vlgmr.msra.gmra.mrb[24].mxu0 %v2781_v8 }
0x1c00   :  { %v3546_v40 = vpop.f32.mrb[24].mxu0 }
0x1c01   :  { %v2875_v1 = vadd.f32 %v3546_v40, %v4785_v57  ;;  %v2865_v0 = vpop.f32.mrb[25].mxu0  ;;  %v2906_v57 = vld [vmem:[#allocation2 + $0x28] sm:$0xff] }
0x1c02   :  { %v2874_v41 = vadd.f32 %v2865_v0, %v4788_v56  ;;  %v3823_v48 = vpack.c.bf16 %v2908_v23, %v2906_v57  ;;  %v2905_v56 = vld [vmem:[#allocation2 + $0x20] sm:$0xff] }
0x1c03   :  { %v2880_v17 = vrot.slane %v2875_v1, 6  ;;  %v3825_v50 = vpack.c.bf16 %v2907_v49, %v2905_v56 }
0x1c04   :  { %v2877_v42 = vrot.slane %v2874_v41, 7  ;;  %3824 = vmatprep.subr.bf16.mxu1 %v3823_v48 }
0x1c05   :  { %3826 = vmatpush1.bf16.msra.mxu1 %v3825_v50 }
0x1c06   :  { %v2883_v21 = vsel %vm2882_vm5, %v2877_v42, %v2880_v17  ;;  %3828 = vmatprep.subr.bf16.mxu1 %v3827_v7 }
0x1c07   :  { %v2885_v43 = vmul.f32 %v2883_v21, %v2883_v21 }
0x1c09   :  { %v2887_v44 = vsel %vm2886_vm6, %v2885_v43, 0.0  ;;  %3830 = vmatpush1.bf16.msra.mxu1 %v3829_v55 }
0x1c0a   :  { %2888 = vadd.xlane.f32.xlu0 %v2887_v44  ;;  %3832 = vmatprep.subr.bf16.mxu1 %v3831_v28 }
0x1c0d   :  { %3834 = vmatpush1.bf16.msra.mxu1 %v3833_v5 }
0x1c97   :  { %v2889_v33 = vpop.xlane.xlu0 %2888 }
0x1c98   :  { %v2890_v12 = vmul.f32 0.015625, %v2889_v33 }
0x1c9a   :  { %v2891_v6 = vadd.f32 1e-05, %v2890_v12 }
0x1c9c   :  { %4001 = vrsqrt.f32 %v2891_v6 }
0x1ca6   :  { %v4002_v13 = vpop.eup %4001 }
0x1ca7   :  { %v2893_v15 = vmul.f32 %v4002_v13, %v2883_v21 }
0x1ca9   :  { %v2900_v16 = vmul.f32 %v3146_v14, %v2893_v15 }
0x1cab   :  { %3147 = vmatmul.mubr.msk.f32.vlgmr.msra.gmra.mrb[34].mxu1 %vm66_vm0, %v2900_v16 }
0x1d7e   :  { %v2986_v18 = vpop.f32.mrb[34].mxu1 }
0x1d7f   :  { %v2988_v20 = vpop.f32.mrb[35].mxu1 }
0x1d80   :  { %v2993_v62 = vcombine.low %v2986_v18, %v2988_v20 }
0x1d82   :  { %3148 = vst.sshfl [vmem:[%s4922_s12] sm:$0x33 pattern:$0x76325410] %v2993_v62 }
0x1d83   :  { %3007 = vsyncpa [#allocation3], 1 }

</bundles_post_ra>
